<compile_context>
chip_gen: v7x
topology: tpu7x:2x2x1
jax: 0.10.0
libtpu: 0.0.40
codegen_flags: <defaults>
</compile_context>

<pallas_src>
import functools

import jax
import jax.numpy as jnp
from jax.experimental import pallas as pl
from jax.experimental.pallas import tpu as pltpu


def _round_up(x, m):
    return (x + m - 1) // m * m


def _conv3x3_stats_kernel(x_ref, w_ref, b_ref, m_ref, o_ref, st_ref, acc_ref,
                          *, tile_rows, wp, stride):
    """One (batch, row-tile) step of the 3x3 conv, plus per-tile BN partial sums.

    x_ref  : (1, P_in, Cin_pad)          zero-padded input, pixel-major (row*wp + col), channels last
    w_ref  : (9, Cin_pad, Cout_pad)      conv taps, tap index = kh*3 + kw
    b_ref  : (1, Cout_pad)               conv bias
    m_ref  : (1, tile_pix, 1)            1.0 for valid output pixels, 0.0 for padding columns/rows
    o_ref  : (1, tile_pix, Cout_pad)     conv output (invalid pixels forced to 0)
    st_ref : (1, 1, 2, Cout_pad)         [sum, sum-of-squares] over this tile
    acc_ref: (stride*tile_pix, Cout_pad) f32 scratch accumulator
    """
    r = pl.program_id(1)
    tile_pix = tile_rows * wp
    slab = stride * tile_pix                       # input pixel rows touched by this tile
    base = r * tile_rows * stride * wp             # first input pixel row (kh = kw = 0)

    for kh in range(3):
        for kw in range(3):
            a = x_ref[0, pl.ds(base + kh * wp + kw, slab), :]     # (slab, Cin_pad), lane-dense
            prod = jnp.dot(a, w_ref[kh * 3 + kw],
                           preferred_element_type=jnp.float32)
            if kh == 0 and kw == 0:
                acc_ref[...] = prod
            else:
                acc_ref[...] += prod

    acc = acc_ref[...]
    if stride > 1:
        # Output pixel (t, w) lives at accumulator row stride*(t*wp + w).
        # TODO(synk): for stride>1 this computes ~stride^2 extra accumulator rows; a strided
        # im2row gather would remove the waste.
        acc = jax.lax.slice(acc, (0, 0),
                            (stride * (tile_pix - 1) + 1, acc.shape[1]),
                            (stride, 1))

    vals = (acc + b_ref[...]) * m_ref[0]                           # (tile_pix, Cout_pad)
    o_ref[0] = vals.astype(o_ref.dtype)
    s1 = jnp.sum(vals, axis=0, keepdims=True)
    s2 = jnp.sum(vals * vals, axis=0, keepdims=True)
    st_ref[0, 0] = jnp.concatenate([s1, s2], axis=0)               # (2, Cout_pad)


def _bn_relu_kernel(y_ref, scale_ref, shift_ref, o_ref):
    """Elementwise y*scale + shift, ReLU.  Streams tiled blocks (lane-dense Cout_pad)."""
    y = y_ref[...]                                                 # (1, tile_pix, Cout_pad)
    o_ref[...] = jnp.maximum(y * scale_ref[...] + shift_ref[...],
                             jnp.float32(0.0)).astype(o_ref.dtype)


def std_conv3x3(x_nchw, weight_oihw, bias, gamma, beta, *,
                stride=1, padding=1, eps=1e-5):
    """Forward pass of StdConv3x3 (Conv2d 3x3 + BatchNorm2d(train stats) + ReLU), NCHW I/O."""
    N, Cin, H, W = x_nchw.shape
    Cout = weight_oihw.shape[0]
    s = int(stride)

    Hp, Wp = H + 2 * padding, W + 2 * padding
    Ho = (Hp - 3) // s + 1
    Wo = (Wp - 3) // s + 1

    Cinp = _round_up(Cin, 128)                     # lane-dense matmul K
    Coutp = _round_up(Cout, 128)                   # lane-dense output N

    # Output-row tile.  tile_pix = TH*Wp must be a multiple of 8 (sublane tiling) unless it is
    # the full pixel axis; fall back to a single tile otherwise.
    TH = min(Ho, 16)
    if (TH * Wp) % 8 != 0:
        TH = Ho
    n_tiles = (Ho + TH - 1) // TH
    Ho_p = n_tiles * TH
    tile_pix = TH * Wp

    # ---- layout plumbing (one fused XLA rewrite): NCHW -> padded, pixel-major, channel-last ----
    # TODO(synk): fold the spatial zero-padding into the kernel (masked border taps) to save this
    # extra HBM pass on very large activations.
    x = jnp.transpose(x_nchw, (0, 2, 3, 1)).astype(jnp.float32)
    x = jnp.pad(x, ((0, 0), (padding, padding), (padding, padding), (0, Cinp - Cin)))
    x = x.reshape(N, Hp * Wp, Cinp)
    P_in = _round_up((Ho_p * s + 2) * Wp + 2, 8)   # covers every tap slab of every row tile
    x = jnp.pad(x, ((0, 0), (0, P_in - Hp * Wp), (0, 0)))

    w9 = jnp.transpose(weight_oihw, (2, 3, 1, 0)).reshape(9, Cin, Cout).astype(jnp.float32)
    w9 = jnp.pad(w9, ((0, 0), (0, Cinp - Cin), (0, Coutp - Cout)))
    b2 = jnp.pad(bias.astype(jnp.float32).reshape(1, Cout), ((0, 0), (0, Coutp - Cout)))

    # Per-tile validity mask: 1.0 where (image row < Ho) and (image col < Wo), else 0.0.
    row_ok = jnp.arange(n_tiles * TH).reshape(n_tiles, TH, 1) < Ho
    col_ok = jnp.arange(Wp).reshape(1, 1, Wp) < Wo
    mask = (row_ok & col_ok).astype(jnp.float32).reshape(n_tiles, tile_pix, 1)

    cparams = pltpu.CompilerParams(
        dimension_semantics=("parallel", "parallel"),
        vmem_limit_bytes=32 * 1024 * 1024)

    # ---- conv + per-tile BN partial sums ----
    conv_out, stats = pl.pallas_call(
        functools.partial(_conv3x3_stats_kernel, tile_rows=TH, wp=Wp, stride=s),
        out_shape=(
            jax.ShapeDtypeStruct((N, Ho_p * Wp, Coutp), jnp.float32),
            jax.ShapeDtypeStruct((N, n_tiles, 2, Coutp), jnp.float32),
        ),
        grid_spec=pltpu.PrefetchScalarGridSpec(
            num_scalar_prefetch=0,
            grid=(N, n_tiles),
            in_specs=[
                pl.BlockSpec((1, P_in, Cinp), lambda n, r: (n, 0, 0)),
                pl.BlockSpec((9, Cinp, Coutp), lambda n, r: (0, 0, 0)),
                pl.BlockSpec((1, Coutp), lambda n, r: (0, 0)),
                pl.BlockSpec((1, tile_pix, 1), lambda n, r: (r, 0, 0)),
            ],
            out_specs=[
                pl.BlockSpec((1, tile_pix, Coutp), lambda n, r: (n, r, 0)),
                pl.BlockSpec((1, 1, 2, Coutp), lambda n, r: (n, r, 0, 0)),
            ],
            scratch_shapes=[pltpu.VMEM((s * tile_pix, Coutp), jnp.float32)],
        ),
        compiler_params=cparams,
    )(x, w9, b2, mask)

    # ---- BN statistics: tiny reduction over per-tile partials (padding pixels contribute 0) ----
    tot = jnp.sum(stats, axis=(0, 1))              # (2, Cout_pad)
    m_valid = float(N * Ho * Wo)
    mean = tot[0] / m_valid
    var = jnp.maximum(tot[1] / m_valid - mean * mean, 0.0)   # biased variance (training-mode BN)
    inv = jax.lax.rsqrt(var + eps)
    gamma_p = jnp.pad(gamma.astype(jnp.float32), (0, Coutp - Cout))
    beta_p = jnp.pad(beta.astype(jnp.float32), (0, Coutp - Cout))
    scale = (gamma_p * inv).reshape(1, Coutp)
    shift = (beta_p - mean * gamma_p * inv).reshape(1, Coutp)

    # ---- normalize + ReLU: tiled, pipelined elementwise pass ----
    bn_out = pl.pallas_call(
        _bn_relu_kernel,
        out_shape=jax.ShapeDtypeStruct((N, Ho_p * Wp, Coutp), jnp.float32),
        grid_spec=pltpu.PrefetchScalarGridSpec(
            num_scalar_prefetch=0,
            grid=(N, n_tiles),
            in_specs=[
                pl.BlockSpec((1, tile_pix, Coutp), lambda n, r: (n, r, 0)),
                pl.BlockSpec((1, Coutp), lambda n, r: (0, 0)),
                pl.BlockSpec((1, Coutp), lambda n, r: (0, 0)),
            ],
            out_specs=pl.BlockSpec((1, tile_pix, Coutp), lambda n, r: (n, r, 0)),
        ),
        compiler_params=cparams,
    )(conv_out, scale, shift)

    # Drop the padding columns/rows/channels and go back to NCHW.
    out = bn_out.reshape(N, Ho_p, Wp, Coutp)[:, :Ho, :Wo, :Cout]
    return jnp.transpose(out, (0, 3, 1, 2))


def _reference(x_nchw, weight_oihw, bias, gamma, beta, *, stride, padding, eps):
    y = jax.lax.conv_general_dilated(
        x_nchw, weight_oihw, window_strides=(stride, stride),
        padding=[(padding, padding), (padding, padding)],
        dimension_numbers=("NCHW", "OIHW", "NCHW"))
    y = y + bias.reshape(1, -1, 1, 1)
    mean = jnp.mean(y, axis=(0, 2, 3), keepdims=True)
    var = jnp.mean((y - mean) ** 2, axis=(0, 2, 3), keepdims=True)
    yn = (y - mean) * jax.lax.rsqrt(var + eps)
    yn = yn * gamma.reshape(1, -1, 1, 1) + beta.reshape(1, -1, 1, 1)
    return jnp.maximum(yn, 0.0)


if __name__ == "__main__":
    N, Cin, Cout, H, W = 2, 4, 8, 16, 16
    stride, padding = 1, 1

    key = jax.random.PRNGKey(0)
    kx, kw, kb = jax.random.split(key, 3)
    x = jax.random.normal(kx, (N, Cin, H, W), dtype=jnp.float32)
    # Deterministic parameter init (shapes from nn.Conv2d / nn.BatchNorm2d).
    weight = jax.random.normal(kw, (Cout, Cin, 3, 3), dtype=jnp.float32) * 0.1
    bias = jax.random.normal(kb, (Cout,), dtype=jnp.float32) * 0.1
    gamma = jnp.ones((Cout,), dtype=jnp.float32)    # BatchNorm2d affine weight init
    beta = jnp.zeros((Cout,), dtype=jnp.float32)    # BatchNorm2d affine bias init

    out = std_conv3x3(x, weight, bias, gamma, beta,
                      stride=stride, padding=padding)
    out = jax.block_until_ready(out)

    ref = _reference(x, weight, bias, gamma, beta,
                     stride=stride, padding=padding, eps=1e-5)
    assert out.shape == ref.shape, (out.shape, ref.shape)
    assert jnp.allclose(out, ref, atol=1e-4, rtol=1e-4), \
        float(jnp.max(jnp.abs(out - ref)))

    print("KERNEL_OK")
</pallas_src>

<mosaic_0001>
module attributes {stable_mosaic.version = 11 : i64} {
  func.func @_conv3x3_stats_kernel(%arg0: i32, %arg1: i32, %arg2: memref<1x328x128xf32, #tpu.memory_space<vmem>>, %arg3: memref<9x128x128xf32, #tpu.memory_space<vmem>>, %arg4: memref<1x128xf32, #tpu.memory_space<vmem>>, %arg5: memref<1x288x1xf32, #tpu.memory_space<vmem>>, %arg6: memref<1x288x128xf32, #tpu.memory_space<vmem>>, %arg7: memref<1x1x2x128xf32, #tpu.memory_space<vmem>>, %arg8: memref<288x128xf32, #tpu.memory_space<vmem>>) attributes {dimension_semantics = [#tpu.dimension_semantics<parallel>, #tpu.dimension_semantics<parallel>], iteration_bounds = array<i64: 2, 1>, scalar_prefetch = 0 : i64, scratch_operands = 1 : i64, tpu.core_type = #tpu.core_type<tc>, window_params = [{transform_indices = @transform_0, window_bounds = array<i64: 1, 328, 128>}, {pipeline_mode = #tpu.pipeline_mode<synchronous>, transform_indices = @transform_1, window_bounds = array<i64: 9, 128, 128>}, {pipeline_mode = #tpu.pipeline_mode<synchronous>, transform_indices = @transform_2, window_bounds = array<i64: 1, 128>}, {transform_indices = @transform_3, window_bounds = array<i64: 1, 288, 1>}, {transform_indices = @transform_4, window_bounds = array<i64: 1, 288, 128>}, {transform_indices = @transform_5, window_bounds = array<i64: 1, 1, 2, 128>}]} {
    %c16_i32 = arith.constant 16 : i32
    %0 = arith.muli %arg1, %c16_i32 : i32
    %c1_i32 = arith.constant 1 : i32
    %1 = arith.muli %0, %c1_i32 : i32
    %c18_i32 = arith.constant 18 : i32
    %2 = arith.muli %1, %c18_i32 : i32
    %c0_i32 = arith.constant 0 : i32
    %3 = arith.addi %2, %c0_i32 : i32
    %c0_i32_0 = arith.constant 0 : i32
    %4 = arith.addi %3, %c0_i32_0 : i32
    %c0 = arith.constant 0 : index
    %5 = arith.index_cast %4 : i32 to index
    %c0_1 = arith.constant 0 : index
    %6 = vector.load %arg2[%c0, %5, %c0_1] : memref<1x328x128xf32, #tpu.memory_space<vmem>>, vector<1x288x128xf32>
    %7 = vector.shape_cast %6 : vector<1x288x128xf32> to vector<288x128xf32>
    %c0_2 = arith.constant 0 : index
    %c0_3 = arith.constant 0 : index
    %c0_4 = arith.constant 0 : index
    %8 = vector.load %arg3[%c0_2, %c0_3, %c0_4] : memref<9x128x128xf32, #tpu.memory_space<vmem>>, vector<1x128x128xf32>
    %9 = vector.shape_cast %8 : vector<1x128x128xf32> to vector<128x128xf32>
    %cst = arith.constant dense<0.000000e+00> : vector<288x128xf32>
    %10 = tpu.matmul %7, %9, %cst {dimension_numbers = #tpu.dot_dimension_numbers<[1], [0], [0], [1], [0, 0, 1, 1], [], []>} : vector<288x128xf32>, vector<128x128xf32>, vector<288x128xf32> -> vector<288x128xf32>
    %c0_5 = arith.constant 0 : index
    %c0_6 = arith.constant 0 : index
    %11 = vector.load %arg8[%c0_5, %c0_6] : memref<288x128xf32, #tpu.memory_space<vmem>>, vector<288x128xf32>
    tpu.vector_store %arg8[%c0_5, %c0_6], %10 {strides = array<i32>} : memref<288x128xf32, #tpu.memory_space<vmem>>, vector<288x128xf32>,
    %c0_i32_7 = arith.constant 0 : i32
    %12 = arith.addi %2, %c0_i32_7 : i32
    %c1_i32_8 = arith.constant 1 : i32
    %13 = arith.addi %12, %c1_i32_8 : i32
    %c0_9 = arith.constant 0 : index
    %14 = arith.index_cast %13 : i32 to index
    %c0_10 = arith.constant 0 : index
    %15 = vector.load %arg2[%c0_9, %14, %c0_10] : memref<1x328x128xf32, #tpu.memory_space<vmem>>, vector<1x288x128xf32>
    %16 = vector.shape_cast %15 : vector<1x288x128xf32> to vector<288x128xf32>
    %c1 = arith.constant 1 : index
    %c0_11 = arith.constant 0 : index
    %c0_12 = arith.constant 0 : index
    %17 = vector.load %arg3[%c1, %c0_11, %c0_12] : memref<9x128x128xf32, #tpu.memory_space<vmem>>, vector<1x128x128xf32>
    %18 = vector.shape_cast %17 : vector<1x128x128xf32> to vector<128x128xf32>
    %cst_13 = arith.constant dense<0.000000e+00> : vector<288x128xf32>
    %19 = tpu.matmul %16, %18, %cst_13 {dimension_numbers = #tpu.dot_dimension_numbers<[1], [0], [0], [1], [0, 0, 1, 1], [], []>} : vector<288x128xf32>, vector<128x128xf32>, vector<288x128xf32> -> vector<288x128xf32>
    %c0_14 = arith.constant 0 : index
    %c0_15 = arith.constant 0 : index
    %20 = vector.load %arg8[%c0_14, %c0_15] : memref<288x128xf32, #tpu.memory_space<vmem>>, vector<288x128xf32>
    %21 = arith.addf %20, %19 : vector<288x128xf32>
    %c0_16 = arith.constant 0 : index
    %c0_17 = arith.constant 0 : index
    %22 = vector.load %arg8[%c0_16, %c0_17] : memref<288x128xf32, #tpu.memory_space<vmem>>, vector<288x128xf32>
    tpu.vector_store %arg8[%c0_16, %c0_17], %21 {strides = array<i32>} : memref<288x128xf32, #tpu.memory_space<vmem>>, vector<288x128xf32>,
    %c0_i32_18 = arith.constant 0 : i32
    %23 = arith.addi %2, %c0_i32_18 : i32
    %c2_i32 = arith.constant 2 : i32
    %24 = arith.addi %23, %c2_i32 : i32
    %c0_19 = arith.constant 0 : index
    %25 = arith.index_cast %24 : i32 to index
    %c0_20 = arith.constant 0 : index
    %26 = vector.load %arg2[%c0_19, %25, %c0_20] : memref<1x328x128xf32, #tpu.memory_space<vmem>>, vector<1x288x128xf32>
    %27 = vector.shape_cast %26 : vector<1x288x128xf32> to vector<288x128xf32>
    %c2 = arith.constant 2 : index
    %c0_21 = arith.constant 0 : index
    %c0_22 = arith.constant 0 : index
    %28 = vector.load %arg3[%c2, %c0_21, %c0_22] : memref<9x128x128xf32, #tpu.memory_space<vmem>>, vector<1x128x128xf32>
    %29 = vector.shape_cast %28 : vector<1x128x128xf32> to vector<128x128xf32>
    %cst_23 = arith.constant dense<0.000000e+00> : vector<288x128xf32>
    %30 = tpu.matmul %27, %29, %cst_23 {dimension_numbers = #tpu.dot_dimension_numbers<[1], [0], [0], [1], [0, 0, 1, 1], [], []>} : vector<288x128xf32>, vector<128x128xf32>, vector<288x128xf32> -> vector<288x128xf32>
    %c0_24 = arith.constant 0 : index
    %c0_25 = arith.constant 0 : index
    %31 = vector.load %arg8[%c0_24, %c0_25] : memref<288x128xf32, #tpu.memory_space<vmem>>, vector<288x128xf32>
    %32 = arith.addf %31, %30 : vector<288x128xf32>
    %c0_26 = arith.constant 0 : index
    %c0_27 = arith.constant 0 : index
    %33 = vector.load %arg8[%c0_26, %c0_27] : memref<288x128xf32, #tpu.memory_space<vmem>>, vector<288x128xf32>
    tpu.vector_store %arg8[%c0_26, %c0_27], %32 {strides = array<i32>} : memref<288x128xf32, #tpu.memory_space<vmem>>, vector<288x128xf32>,
    %c18_i32_28 = arith.constant 18 : i32
    %34 = arith.addi %2, %c18_i32_28 : i32
    %c0_i32_29 = arith.constant 0 : i32
    %35 = arith.addi %34, %c0_i32_29 : i32
    %c0_30 = arith.constant 0 : index
    %36 = arith.index_cast %35 : i32 to index
    %c0_31 = arith.constant 0 : index
    %37 = vector.load %arg2[%c0_30, %36, %c0_31] : memref<1x328x128xf32, #tpu.memory_space<vmem>>, vector<1x288x128xf32>
    %38 = vector.shape_cast %37 : vector<1x288x128xf32> to vector<288x128xf32>
    %c3 = arith.constant 3 : index
    %c0_32 = arith.constant 0 : index
    %c0_33 = arith.constant 0 : index
    %39 = vector.load %arg3[%c3, %c0_32, %c0_33] : memref<9x128x128xf32, #tpu.memory_space<vmem>>, vector<1x128x128xf32>
    %40 = vector.shape_cast %39 : vector<1x128x128xf32> to vector<128x128xf32>
    %cst_34 = arith.constant dense<0.000000e+00> : vector<288x128xf32>
    %41 = tpu.matmul %38, %40, %cst_34 {dimension_numbers = #tpu.dot_dimension_numbers<[1], [0], [0], [1], [0, 0, 1, 1], [], []>} : vector<288x128xf32>, vector<128x128xf32>, vector<288x128xf32> -> vector<288x128xf32>
    %c0_35 = arith.constant 0 : index
    %c0_36 = arith.constant 0 : index
    %42 = vector.load %arg8[%c0_35, %c0_36] : memref<288x128xf32, #tpu.memory_space<vmem>>, vector<288x128xf32>
    %43 = arith.addf %42, %41 : vector<288x128xf32>
    %c0_37 = arith.constant 0 : index
    %c0_38 = arith.constant 0 : index
    %44 = vector.load %arg8[%c0_37, %c0_38] : memref<288x128xf32, #tpu.memory_space<vmem>>, vector<288x128xf32>
    tpu.vector_store %arg8[%c0_37, %c0_38], %43 {strides = array<i32>} : memref<288x128xf32, #tpu.memory_space<vmem>>, vector<288x128xf32>,
    %c18_i32_39 = arith.constant 18 : i32
    %45 = arith.addi %2, %c18_i32_39 : i32
    %c1_i32_40 = arith.constant 1 : i32
    %46 = arith.addi %45, %c1_i32_40 : i32
    %c0_41 = arith.constant 0 : index
    %47 = arith.index_cast %46 : i32 to index
    %c0_42 = arith.constant 0 : index
    %48 = vector.load %arg2[%c0_41, %47, %c0_42] : memref<1x328x128xf32, #tpu.memory_space<vmem>>, vector<1x288x128xf32>
    %49 = vector.shape_cast %48 : vector<1x288x128xf32> to vector<288x128xf32>
    %c4 = arith.constant 4 : index
    %c0_43 = arith.constant 0 : index
    %c0_44 = arith.constant 0 : index
    %50 = vector.load %arg3[%c4, %c0_43, %c0_44] : memref<9x128x128xf32, #tpu.memory_space<vmem>>, vector<1x128x128xf32>
    %51 = vector.shape_cast %50 : vector<1x128x128xf32> to vector<128x128xf32>
    %cst_45 = arith.constant dense<0.000000e+00> : vector<288x128xf32>
    %52 = tpu.matmul %49, %51, %cst_45 {dimension_numbers = #tpu.dot_dimension_numbers<[1], [0], [0], [1], [0, 0, 1, 1], [], []>} : vector<288x128xf32>, vector<128x128xf32>, vector<288x128xf32> -> vector<288x128xf32>
    %c0_46 = arith.constant 0 : index
    %c0_47 = arith.constant 0 : index
    %53 = vector.load %arg8[%c0_46, %c0_47] : memref<288x128xf32, #tpu.memory_space<vmem>>, vector<288x128xf32>
    %54 = arith.addf %53, %52 : vector<288x128xf32>
    %c0_48 = arith.constant 0 : index
    %c0_49 = arith.constant 0 : index
    %55 = vector.load %arg8[%c0_48, %c0_49] : memref<288x128xf32, #tpu.memory_space<vmem>>, vector<288x128xf32>
    tpu.vector_store %arg8[%c0_48, %c0_49], %54 {strides = array<i32>} : memref<288x128xf32, #tpu.memory_space<vmem>>, vector<288x128xf32>,
    %c18_i32_50 = arith.constant 18 : i32
    %56 = arith.addi %2, %c18_i32_50 : i32
    %c2_i32_51 = arith.constant 2 : i32
    %57 = arith.addi %56, %c2_i32_51 : i32
    %c0_52 = arith.constant 0 : index
    %58 = arith.index_cast %57 : i32 to index
    %c0_53 = arith.constant 0 : index
    %59 = vector.load %arg2[%c0_52, %58, %c0_53] : memref<1x328x128xf32, #tpu.memory_space<vmem>>, vector<1x288x128xf32>
    %60 = vector.shape_cast %59 : vector<1x288x128xf32> to vector<288x128xf32>
    %c5 = arith.constant 5 : index
    %c0_54 = arith.constant 0 : index
    %c0_55 = arith.constant 0 : index
    %61 = vector.load %arg3[%c5, %c0_54, %c0_55] : memref<9x128x128xf32, #tpu.memory_space<vmem>>, vector<1x128x128xf32>
    %62 = vector.shape_cast %61 : vector<1x128x128xf32> to vector<128x128xf32>
    %cst_56 = arith.constant dense<0.000000e+00> : vector<288x128xf32>
    %63 = tpu.matmul %60, %62, %cst_56 {dimension_numbers = #tpu.dot_dimension_numbers<[1], [0], [0], [1], [0, 0, 1, 1], [], []>} : vector<288x128xf32>, vector<128x128xf32>, vector<288x128xf32> -> vector<288x128xf32>
    %c0_57 = arith.constant 0 : index
    %c0_58 = arith.constant 0 : index
    %64 = vector.load %arg8[%c0_57, %c0_58] : memref<288x128xf32, #tpu.memory_space<vmem>>, vector<288x128xf32>
    %65 = arith.addf %64, %63 : vector<288x128xf32>
    %c0_59 = arith.constant 0 : index
    %c0_60 = arith.constant 0 : index
    %66 = vector.load %arg8[%c0_59, %c0_60] : memref<288x128xf32, #tpu.memory_space<vmem>>, vector<288x128xf32>
    tpu.vector_store %arg8[%c0_59, %c0_60], %65 {strides = array<i32>} : memref<288x128xf32, #tpu.memory_space<vmem>>, vector<288x128xf32>,
    %c36_i32 = arith.constant 36 : i32
    %67 = arith.addi %2, %c36_i32 : i32
    %c0_i32_61 = arith.constant 0 : i32
    %68 = arith.addi %67, %c0_i32_61 : i32
    %c0_62 = arith.constant 0 : index
    %69 = arith.index_cast %68 : i32 to index
    %c0_63 = arith.constant 0 : index
    %70 = vector.load %arg2[%c0_62, %69, %c0_63] : memref<1x328x128xf32, #tpu.memory_space<vmem>>, vector<1x288x128xf32>
    %71 = vector.shape_cast %70 : vector<1x288x128xf32> to vector<288x128xf32>
    %c6 = arith.constant 6 : index
    %c0_64 = arith.constant 0 : index
    %c0_65 = arith.constant 0 : index
    %72 = vector.load %arg3[%c6, %c0_64, %c0_65] : memref<9x128x128xf32, #tpu.memory_space<vmem>>, vector<1x128x128xf32>
    %73 = vector.shape_cast %72 : vector<1x128x128xf32> to vector<128x128xf32>
    %cst_66 = arith.constant dense<0.000000e+00> : vector<288x128xf32>
    %74 = tpu.matmul %71, %73, %cst_66 {dimension_numbers = #tpu.dot_dimension_numbers<[1], [0], [0], [1], [0, 0, 1, 1], [], []>} : vector<288x128xf32>, vector<128x128xf32>, vector<288x128xf32> -> vector<288x128xf32>
    %c0_67 = arith.constant 0 : index
    %c0_68 = arith.constant 0 : index
    %75 = vector.load %arg8[%c0_67, %c0_68] : memref<288x128xf32, #tpu.memory_space<vmem>>, vector<288x128xf32>
    %76 = arith.addf %75, %74 : vector<288x128xf32>
    %c0_69 = arith.constant 0 : index
    %c0_70 = arith.constant 0 : index
    %77 = vector.load %arg8[%c0_69, %c0_70] : memref<288x128xf32, #tpu.memory_space<vmem>>, vector<288x128xf32>
    tpu.vector_store %arg8[%c0_69, %c0_70], %76 {strides = array<i32>} : memref<288x128xf32, #tpu.memory_space<vmem>>, vector<288x128xf32>,
    %c36_i32_71 = arith.constant 36 : i32
    %78 = arith.addi %2, %c36_i32_71 : i32
    %c1_i32_72 = arith.constant 1 : i32
    %79 = arith.addi %78, %c1_i32_72 : i32
    %c0_73 = arith.constant 0 : index
    %80 = arith.index_cast %79 : i32 to index
    %c0_74 = arith.constant 0 : index
    %81 = vector.load %arg2[%c0_73, %80, %c0_74] : memref<1x328x128xf32, #tpu.memory_space<vmem>>, vector<1x288x128xf32>
    %82 = vector.shape_cast %81 : vector<1x288x128xf32> to vector<288x128xf32>
    %c7 = arith.constant 7 : index
    %c0_75 = arith.constant 0 : index
    %c0_76 = arith.constant 0 : index
    %83 = vector.load %arg3[%c7, %c0_75, %c0_76] : memref<9x128x128xf32, #tpu.memory_space<vmem>>, vector<1x128x128xf32>
    %84 = vector.shape_cast %83 : vector<1x128x128xf32> to vector<128x128xf32>
    %cst_77 = arith.constant dense<0.000000e+00> : vector<288x128xf32>
    %85 = tpu.matmul %82, %84, %cst_77 {dimension_numbers = #tpu.dot_dimension_numbers<[1], [0], [0], [1], [0, 0, 1, 1], [], []>} : vector<288x128xf32>, vector<128x128xf32>, vector<288x128xf32> -> vector<288x128xf32>
    %c0_78 = arith.constant 0 : index
    %c0_79 = arith.constant 0 : index
    %86 = vector.load %arg8[%c0_78, %c0_79] : memref<288x128xf32, #tpu.memory_space<vmem>>, vector<288x128xf32>
    %87 = arith.addf %86, %85 : vector<288x128xf32>
    %c0_80 = arith.constant 0 : index
    %c0_81 = arith.constant 0 : index
    %88 = vector.load %arg8[%c0_80, %c0_81] : memref<288x128xf32, #tpu.memory_space<vmem>>, vector<288x128xf32>
    tpu.vector_store %arg8[%c0_80, %c0_81], %87 {strides = array<i32>} : memref<288x128xf32, #tpu.memory_space<vmem>>, vector<288x128xf32>,
    %c36_i32_82 = arith.constant 36 : i32
    %89 = arith.addi %2, %c36_i32_82 : i32
    %c2_i32_83 = arith.constant 2 : i32
    %90 = arith.addi %89, %c2_i32_83 : i32
    %c0_84 = arith.constant 0 : index
    %91 = arith.index_cast %90 : i32 to index
    %c0_85 = arith.constant 0 : index
    %92 = vector.load %arg2[%c0_84, %91, %c0_85] : memref<1x328x128xf32, #tpu.memory_space<vmem>>, vector<1x288x128xf32>
    %93 = vector.shape_cast %92 : vector<1x288x128xf32> to vector<288x128xf32>
    %c8 = arith.constant 8 : index
    %c0_86 = arith.constant 0 : index
    %c0_87 = arith.constant 0 : index
    %94 = vector.load %arg3[%c8, %c0_86, %c0_87] : memref<9x128x128xf32, #tpu.memory_space<vmem>>, vector<1x128x128xf32>
    %95 = vector.shape_cast %94 : vector<1x128x128xf32> to vector<128x128xf32>
    %cst_88 = arith.constant dense<0.000000e+00> : vector<288x128xf32>
    %96 = tpu.matmul %93, %95, %cst_88 {dimension_numbers = #tpu.dot_dimension_numbers<[1], [0], [0], [1], [0, 0, 1, 1], [], []>} : vector<288x128xf32>, vector<128x128xf32>, vector<288x128xf32> -> vector<288x128xf32>
    %c0_89 = arith.constant 0 : index
    %c0_90 = arith.constant 0 : index
    %97 = vector.load %arg8[%c0_89, %c0_90] : memref<288x128xf32, #tpu.memory_space<vmem>>, vector<288x128xf32>
    %98 = arith.addf %97, %96 : vector<288x128xf32>
    %c0_91 = arith.constant 0 : index
    %c0_92 = arith.constant 0 : index
    %99 = vector.load %arg8[%c0_91, %c0_92] : memref<288x128xf32, #tpu.memory_space<vmem>>, vector<288x128xf32>
    tpu.vector_store %arg8[%c0_91, %c0_92], %98 {strides = array<i32>} : memref<288x128xf32, #tpu.memory_space<vmem>>, vector<288x128xf32>,
    %c0_93 = arith.constant 0 : index
    %c0_94 = arith.constant 0 : index
    %100 = vector.load %arg8[%c0_93, %c0_94] : memref<288x128xf32, #tpu.memory_space<vmem>>, vector<288x128xf32>
    %c0_95 = arith.constant 0 : index
    %c0_96 = arith.constant 0 : index
    %101 = vector.load %arg4[%c0_95, %c0_96] : memref<1x128xf32, #tpu.memory_space<vmem>>, vector<1x128xf32>
    %102 = vector.broadcast %101 : vector<1x128xf32> to vector<288x128xf32>
    %103 = arith.addf %100, %102 : vector<288x128xf32>
    %c0_97 = arith.constant 0 : index
    %c0_98 = arith.constant 0 : index
    %c0_99 = arith.constant 0 : index
    %104 = vector.load %arg5[%c0_97, %c0_98, %c0_99] : memref<1x288x1xf32, #tpu.memory_space<vmem>>, vector<1x288x1xf32>
    %105 = vector.shape_cast %104 : vector<1x288x1xf32> to vector<288x1xf32>
    %106 = vector.broadcast %105 : vector<288x1xf32> to vector<288x128xf32>
    %107 = arith.mulf %103, %106 : vector<288x128xf32>
    %c0_100 = arith.constant 0 : index
    %c0_101 = arith.constant 0 : index
    %c0_102 = arith.constant 0 : index
    %108 = vector.load %arg6[%c0_100, %c0_101, %c0_102] : memref<1x288x128xf32, #tpu.memory_space<vmem>>, vector<1x288x128xf32>
    %109 = vector.shape_cast %108 : vector<1x288x128xf32> to vector<288x128xf32>
    %110 = vector.shape_cast %107 : vector<288x128xf32> to vector<1x288x128xf32>
    tpu.vector_store %arg6[%c0_100, %c0_101, %c0_102], %110 {strides = array<i32>} : memref<1x288x128xf32, #tpu.memory_space<vmem>>, vector<1x288x128xf32>,
    %cst_103 = arith.constant dense<0.000000e+00> : vector<128xf32>
    %111 = vector.multi_reduction <add>, %107, %cst_103 [0] : vector<288x128xf32> to vector<128xf32>
    %112 = vector.shape_cast %111 : vector<128xf32> to vector<1x128xf32>
    %113 = arith.mulf %107, %107 : vector<288x128xf32>
    %cst_104 = arith.constant dense<0.000000e+00> : vector<128xf32>
    %114 = vector.multi_reduction <add>, %113, %cst_104 [0] : vector<288x128xf32> to vector<128xf32>
    %115 = vector.shape_cast %114 : vector<128xf32> to vector<1x128xf32>
    %116 = tpu.concatenate %112, %115 in 0 : vector<1x128xf32>, vector<1x128xf32> -> vector<2x128xf32>
    %c0_105 = arith.constant 0 : index
    %c0_106 = arith.constant 0 : index
    %c0_107 = arith.constant 0 : index
    %c0_108 = arith.constant 0 : index
    %117 = vector.load %arg7[%c0_105, %c0_106, %c0_107, %c0_108] : memref<1x1x2x128xf32, #tpu.memory_space<vmem>>, vector<1x1x2x128xf32>
    %118 = vector.shape_cast %117 : vector<1x1x2x128xf32> to vector<2x128xf32>
    %119 = vector.shape_cast %116 : vector<2x128xf32> to vector<1x1x2x128xf32>
    tpu.vector_store %arg7[%c0_105, %c0_106, %c0_107, %c0_108], %119 {strides = array<i32>} : memref<1x1x2x128xf32, #tpu.memory_space<vmem>>, vector<1x1x2x128xf32>,
    return
  }
  func.func @transform_0(%arg0: i32, %arg1: i32) -> (i32, i32, i32) {
    %c0_i32 = arith.constant 0 : i32
    %c0_i32_0 = arith.constant 0 : i32
    %c0_i32_1 = arith.constant 0 : i32
    return %arg0, %c0_i32, %c0_i32_0 : i32, i32, i32
  }
  func.func @transform_1(%arg0: i32, %arg1: i32) -> (i32, i32, i32) {
    %c0_i32 = arith.constant 0 : i32
    %c0_i32_0 = arith.constant 0 : i32
    %c0_i32_1 = arith.constant 0 : i32
    %c0_i32_2 = arith.constant 0 : i32
    return %c0_i32, %c0_i32_0, %c0_i32_1 : i32, i32, i32
  }
  func.func @transform_2(%arg0: i32, %arg1: i32) -> (i32, i32) {
    %c0_i32 = arith.constant 0 : i32
    %c0_i32_0 = arith.constant 0 : i32
    %c0_i32_1 = arith.constant 0 : i32
    return %c0_i32, %c0_i32_0 : i32, i32
  }
  func.func @transform_3(%arg0: i32, %arg1: i32) -> (i32, i32, i32) {
    %c0_i32 = arith.constant 0 : i32
    %c0_i32_0 = arith.constant 0 : i32
    %c0_i32_1 = arith.constant 0 : i32
    return %arg1, %c0_i32, %c0_i32_0 : i32, i32, i32
  }
  func.func @transform_4(%arg0: i32, %arg1: i32) -> (i32, i32, i32) {
    %c0_i32 = arith.constant 0 : i32
    %c0_i32_0 = arith.constant 0 : i32
    return %arg0, %arg1, %c0_i32 : i32, i32, i32
  }
  func.func @transform_5(%arg0: i32, %arg1: i32) -> (i32, i32, i32, i32) {
    %c0_i32 = arith.constant 0 : i32
    %c0_i32_0 = arith.constant 0 : i32
    %c0_i32_1 = arith.constant 0 : i32
    return %arg0, %arg1, %c0_i32, %c0_i32_0 : i32, i32, i32, i32
  }
}

</mosaic_0001>

<bundles_post_ra>
// kernel: tpu_custom_call.1
= control target key start
LH: loop header
LB: loop body
LE: loop exit
PB: predicated region body
PF: predicated region fallthrough
CT: control target
= control target key end

     0   :  { %11 = vsyncpa [#allocation4], 0  ;;  %s8164_s0 = inlined_call_operand.hbm [shape: f32[2,328,128], index: 0, kind: input, shape index: {}]   ;;  %s8165_s1 = inlined_call_operand.hbm [shape: f32[9,128,128], index: 1, kind: input, shape index: {}]   ;;  %s8166_s2 = inlined_call_operand.vmem [shape: f32[1,128], index: 2, kind: input, shape index: {}]   ;;  %s8167_s3 = inlined_call_operand.vmem [shape: f32[1,288,1], index: 3, kind: input, shape index: {}]   ;;  %s8168_s4 = inlined_call_operand.hbm [shape: f32[2,288,128], index: 4, kind: output, shape index: {0}]   ;;  %s8169_s5 = inlined_call_operand.hbm [shape: f32[2,1,2,128], index: 5, kind: output, shape index: {1}]  }
   0x1   :  { %13 = vsyncpa [#allocation4 + $0x1], 0 }
   0x2   :  { %14 = vsyncpa [#allocation7], 0 }
   0x3   :  { %15 = vsyncpa [#allocation5], 0 }
   0x4   :  { %17 = vsyncpa [#allocation5 + $0x1], 0 }
   0x5   :  { %18 = vsyncpa [#allocation10], 0 }
   0x6   :  { %20 = vsyncpa [#allocation10 + $0x1], 0  ;;  %s7041_s18 = smov 0   ;;  %s7043_s19 = smov 0  }
   0x7   :  { %s7045_s20 = smov 0   ;;  %s7047_s21 = smov 0  }
   0x8   :  { %s7049_s22 = smov 0   ;;  %s7051_s23 = smov 0  }
   0x9 LB: > { %s4596_s24 = sadd.s32 4294967295, %s7000_s23   ;;  %s4597_s25 = sadd.s32 4294967294, %s7000_s23   ;;  %s7000_s23 = sphi %s7051_s23, %s26_s23   ;;  %s6996_s22 = sphi %s7049_s22, %s8194_s22   ;;  %s6992_s21 = sphi %s7047_s21, %s8193_s21   ;;  %s6988_s20 = sphi %s7045_s20, %s8192_s20   ;;  %s6984_s19 = sphi %s7043_s19, %s8191_s19   ;;  %s6980_s18 = sphi %s7041_s18, %s8190_s18  }
   0xa   : > { %p58_p0 = scmp.ne.s32.totalorder %s6984_s19, %s6980_s18  ;;  %p7075_p1 = scmp.eq.s32.totalorder %s4596_s24, 0 }
   0xb   : > { %p7079_p2 = scmp.eq.s32.totalorder %s4596_s24, 1  ;;  %p158_p3 = scmp.eq.s32.totalorder %s4597_s25, 1 }
   0xc   : > { %s8175_s26 = scalar_select %p7075_p1, 1, 0 }
   0xd   : > { %s8176_s27 = scalar_select %p7079_p2, 1, 0 }
   0xe   : > { %p7085_p4 = por %p7075_p1, %p58_p0  ;;  %p4598_p5 = scmp.ge.s32.totalorder %s7000_s23, 1 }
   0xf   : > { %p7090_p6 = por %p158_p3, %p58_p0  ;;  %p193_p7 = scmp.lt.s32.totalorder %s7000_s23, 3 }
  0x10   : > { %s8177_s28 = scalar_select %p7085_p4, 1, 0 }
  0x11   : > { %s8178_s29 = scalar_select %p7090_p6, 1, 0 }
  0x12   : > { %p7095_p8 = pnand %p4598_p5, %p193_p7  ;;  %s7002_s6 = smov [#allocation6]  }
  0x13   : > { %s205_s7 = sshll.u32 %s7002_s6, 4  ;;  %s38_s9 = sadd.s32 1, %s6996_s22  ;;  %s206_s7 = int_to_ptr.vmem [resolvable:$true] %s205_s7 }
  0x14   : > { %s8179_s30 = scalar_select %p7095_p8, 1, 0 }
  0x15   : > { %p6749_p9 = pneg %p7095_p8  ;;  %s6824_s12 = scalar_lea.hbm %s8165_s1, 18432 }
  0x16   : > { %p6825_p12 = scmp.ne.s32.totalorder %s8165_s1, %s6824_s12  ;;  %p6831_p5 = scmp.lt.u32.totalorder %s6824_s12, %s8165_s1 }
  0x17   : > { %p7104_p11 = pnand %p6749_p9, %p7075_p1 }
  0x19   : > { %p6826_p13 = pneg %p7104_p11 }
  0x1b   : > { %p6827_p0 = pnand %p6826_p13, %p6825_p12 }
  0x1d   : > { %p6828_p3 = pneg %p6827_p0 }
  0x1f   : > { %p6833_p7 = pnand %p6831_p5, %p6828_p3 }
  0x21   : > { %6836 = shalt.err (!%p6833_p7)
}
  0x22   : > { %s6837_s17 = scalar_lea.vmem %s206_s7, 18432  ;;  %p6845_p1 = scmp.lt.s32.totalorder %s206_s7, %s206_s7 }
  0x23   : > { %p6838_p9 = scmp.ne.s32.totalorder %s206_s7, %s6837_s17  ;;  %p6846_p4 = scmp.lt.s32.totalorder %s6837_s17, %s6837_s17 }
  0x25   : > { %p6840_p10 = pnand %p6838_p9, %p6826_p13  ;;  %p6847_p8 = por %p6846_p4, %p6845_p1 }
  0x27   : > { %p6841_p6 = pneg %p6840_p10 }
  0x29   : > { %p6848_p2 = pnand %p6847_p8, %p6841_p6 }
  0x2b   : > { %6851 = shalt.err (!%p6848_p2)
}
  0x2c   : > { %s8174_s24 = smov 128   ;;  %s7004_s25 = smov 8  }
  0x2d   : > { %6752 = dma.hbm_to_vmem [thread:$0]  (!%p7104_p11), %s8165_s1, 18432, %s206_s7, [#allocation7], %s8174_s24, %s8174_s24, %s7004_s25  }
  0x2e   : > { %p40_p1 = scmp.ge.s32.totalorder %s38_s9, 2  ;;  %s45_s11 = sadd.s32 1, %s6988_s20 }
  0x2f   : > { %p52_p2 = scmp.ne.s32.totalorder %s6988_s20, %s6984_s19  ;;  %p53_p4 = scmp.eq.s32.totalorder %s7000_s23, 0 }
  0x30   : > { %s8196_s9 = smov (%p40_p1, %s38_s9), 0  ;;  %p8181_p8 = scmp.ne.s32.totalorder %s8176_s27, 0 }
  0x31   : > { %p54_p6 = por %p53_p4, %p52_p2  ;;  %s42_s8 = ssub.s32 %s6996_s22, %s8196_s9 }
  0x32   : > { %p7136_p10 = por %p8181_p8, %p52_p2  ;;  %p6765_p12 = scmp.lt.s32.totalorder %s7000_s23, 2 }
  0x33   : > { %p43_p13 = scmp.eq.s32.totalorder %s42_s8, 0  ;;  %s230_s13 = sand.u32 1, %s6988_s20  }
  0x34   : > { %s6734_s14 = smul.u32 328, %s230_s13  ;;  %p7148_p11 = pnand %p6765_p12, %p54_p6 }
  0x35   : > { %s7145_s15 = scalar_select %p43_p13, %s6988_s20, %s45_s11  }
  0x36   : > { %s6735_s7 = smul.u32 5248, %s6996_s22  ;;  %s234_s16 = scalar_lea.vmem [#allocation3], %s6734_s14 }
  0x37   : > { %s241_s17 = sshll.u32 %s234_s16, 4  ;;  %s7159_s11 = scalar_lea.sflag [#allocation4], %s230_s13  ;;  %s7157_s17 = int_to_ptr.vmem [resolvable:$true] %s241_s17 }
  0x38   : > { %s7155_s24 = scalar_lea.hbm %s8164_s0, %s6735_s7  ;;  %p6854_p3 = pneg %p7148_p11 }
  0x39   : > { %s6852_s8 = scalar_lea.hbm %s7155_s24, 5248  ;;  %s6857_s7 = scalar_lea.hbm %s8164_s0, 10496 }
  0x3a   : > { %p6853_p0 = scmp.ne.s32.totalorder %s7155_s24, %s6852_s8  ;;  %p6858_p9 = scmp.lt.u32.totalorder %s7155_s24, %s8164_s0 }
  0x3b   : > { %p6859_p1 = scmp.lt.u32.totalorder %s6857_s7, %s6852_s8  ;;  %p6861_p4 = scmp.lt.u32.totalorder %s6852_s8, %s7155_s24 }
  0x3c   : > { %p6855_p5 = pnand %p6854_p3, %p6853_p0 }
  0x3d   : > { %p6860_p2 = por %p6859_p1, %p6858_p9 }
  0x3e   : > { %p6856_p7 = pneg %p6855_p5 }
  0x3f   : > { %p6862_p6 = por %p6861_p4, %p6860_p2 }
  0x41   : > { %p6863_p8 = pnand %p6862_p6, %p6856_p7 }
  0x43   : > { %6866 = shalt.err (!%p6863_p8)
}
  0x44   : > { %s6867_s13 = scalar_lea.vmem %s7157_s17, 5248  ;;  %s7005_s14 = smov [#allocation3]  }
  0x45   : > { %p6868_p12 = scmp.ne.s32.totalorder %s7157_s17, %s6867_s13  ;;  %s6872_s16 = sshll.u32 %s7005_s14, 4  ;;  %s6873_s16 = int_to_ptr.vmem [resolvable:$false] %s6872_s16 }
  0x46   : > { %s6874_s10 = scalar_lea.vmem %s6873_s16, 10496  ;;  %p6875_p5 = scmp.lt.s32.totalorder %s7157_s17, %s6873_s16 }
  0x47   : > { %p6870_p13 = pnand %p6868_p12, %p6854_p3  ;;  %p6876_p9 = scmp.lt.s32.totalorder %s6874_s10, %s6867_s13 }
  0x49   : > { %p6871_p0 = pneg %p6870_p13  ;;  %p6877_p1 = por %p6876_p9, %p6875_p5 }
  0x4b   : > { %p6878_p2 = pnand %p6877_p1, %p6871_p0 }
  0x4d   : > { %6881 = shalt.err (!%p6878_p2)
}
  0x4e   : > { %s8184_s8 = smov 128   ;;  %p8185_p3 = scmp.ne.s32.totalorder %s8179_s30, 0 }
  0x4f   : > { %6756 = dma.hbm_to_vmem [thread:$0]  (!%p7148_p11), %s7155_s24, 5248, %s7157_s17, %s7159_s11, %s8184_s8, %s8184_s8, %s7004_s25  }
  0x50   : > { %253 = sbr.rel (%p8185_p3) target bundleno = 710 (0x2c6), region = 36  ;;  %s7193_s7 = sand.u32 (!%p8185_p3), 1, %s6984_s19  }
  0x51   : > { %s6736_s27 = smul.u32 (!%p8185_p3), 328, %s7193_s7  ;;  %s256_s13 = scalar_lea.sflag (!%p8185_p3), [#allocation4], %s7193_s7 }
  0x52   : > { %p8186_p7 = scmp.ne.s32.totalorder (!%p8185_p3), %s8177_s28, 0 }
  0x53   : > { %s7197_s14 = scalar_lea.vmem (!%p8185_p3), [#allocation3], %s6736_s27 }
  0x57   : > { %6963 = dma.done.wait (%p8186_p7), %s256_s13, 5248  }
  0x58   : > { %6965 = vsyncadd (%p8186_p7), %s256_s13, 4294962048  ;;  %p8187_p11 = scmp.ne.s32.totalorder %s8175_s26, 0 }
  0x5a   : > { %6967 = dma.done.wait (%p8187_p11), [#allocation7], 18432  }
  0x5b   : > { %6969 = vsyncadd (%p8187_p11), [#allocation7], 4294948864  ;;  %v344_v0 = vld [vmem:[#allocation6] sm:$0xff]  ;;  %v345_v1 = vld [vmem:[#allocation6 + $0x8] sm:$0xff]  ;;  %s6738_s8 = smul.u32 4608, %s6992_s21  ;;  %s4394_s30 = scalar_lea.sflag [#allocation5], %s7193_s7 }
  0x5c   : > { %v1904_v2 = vld [vmem:[#allocation6 + $0x200] sm:$0xff]  ;;  %v6142_v3 = vpack.c.bf16 %v345_v1, %v344_v0  ;;  %v1905_v4 = vld [vmem:[#allocation6 + $0x208] sm:$0xff]  ;;  %v346_v5 = vld [vmem:[#allocation6 + $0x10] sm:$0xff]  ;;  %s7007_s25 = smov [#allocation8]  }
  0x5d   : > { %v347_v6 = vld [vmem:[#allocation6 + $0x18] sm:$0xff]  ;;  %v7207_v7 = vpack.c.bf16 %v1905_v4, %v1904_v2  ;;  %v1906_v9 = vld [vmem:[#allocation6 + $0x210] sm:$0xff]  ;;  %v348_v11 = vld [vmem:[#allocation6 + $0x20] sm:$0xff]  ;;  %s8080_s28 = scalar_lea.hbm %s8168_s4, %s6738_s8  ;;  %s6886_s17 = sshll.u32 %s7007_s25, 4  ;;  %s6887_s17 = int_to_ptr.vmem [resolvable:$false] %s6886_s17 }
  0x5e   : > { %v6146_v8 = vpack.c.bf16 %v347_v6, %v346_v5  ;;  %v1907_v10 = vld [vmem:[#allocation6 + $0x218] sm:$0xff]  ;;  %6143 = vmatprep.subr.bf16.mxu1 %v6142_v3  ;;  %v349_v13 = vld [vmem:[#allocation6 + $0x28] sm:$0xff]  ;;  %v1908_v14 = vld [vmem:[#allocation6 + $0x220] sm:$0xff]  ;;  %s6888_s6 = scalar_lea.vmem %s6887_s17, 9216 }
  0x5f   : > { %v7209_v12 = vpack.c.bf16 %v1907_v10, %v1906_v9  ;;  %v1909_v15 = vld [vmem:[#allocation6 + $0x228] sm:$0xff]  ;;  %6271 = vmatprep.subr.bf16.mxu0 %v7207_v7  ;;  %6145 = vmatpush3.bf16.msra.mxu1 %v6142_v3  ;;  %v6150_v16 = vpack.c.bf16 %v349_v13, %v348_v11  ;;  %v350_v18 = vld [vmem:[#allocation6 + $0x30] sm:$0xff]  ;;  %v351_v19 = vld [vmem:[#allocation6 + $0x38] sm:$0xff] }
  0x60   : > { %6273 = vmatpush3.bf16.msra.mxu0 %v7207_v7  ;;  %6147 = vmatprep.subr.bf16.mxu1 %v6146_v8  ;;  %v7214_v17 = vpack.c.bf16 %v1909_v15, %v1908_v14  ;;  %v1910_v20 = vld [vmem:[#allocation6 + $0x230] sm:$0xff]  ;;  %v1911_v21 = vld [vmem:[#allocation6 + $0x238] sm:$0xff]  ;;  %v6154_v22 = vpack.c.bf16 %v351_v19, %v350_v18  ;;  %v352_v24 = vld [vmem:[#allocation6 + $0x40] sm:$0xff] }
  0x61   : > { %6275 = vmatprep.subr.bf16.mxu0 %v7209_v12  ;;  %v7218_v23 = vpack.c.bf16 %v1911_v21, %v1910_v20  ;;  %v353_v25 = vld [vmem:[#allocation6 + $0x48] sm:$0xff]  ;;  %v308_v26 = vld [vmem:[%s7197_s14] sm:$0xff]  ;;  %v1912_v27 = vld [vmem:[#allocation6 + $0x240] sm:$0xff] }
  0x62   : > { %v1913_v28 = vld [vmem:[#allocation6 + $0x248] sm:$0xff]  ;;  %5400 = vmatprep.mubr.f32.mxu1 %v308_v26  ;;  %v6158_v30 = vpack.c.bf16 %v353_v25, %v352_v24  ;;  %v354_v32 = vld [vmem:[#allocation6 + $0x50] sm:$0xff]  ;;  %v355_v33 = vld [vmem:[#allocation6 + $0x58] sm:$0xff] }
  0x63   : > { %6149 = vmatpush3.bf16.msra.mxu1 %v6146_v8  ;;  %v4714_v29 = vld [vmem:[%s7197_s14 + $0x13] sm:$0xff]  ;;  %v7224_v31 = vpack.c.bf16 %v1913_v28, %v1912_v27  ;;  %v1915_v35 = vld [vmem:[#allocation6 + $0x258] sm:$0xff]  ;;  %v6162_v36 = vpack.c.bf16 %v355_v33, %v354_v32 }
  0x64   : > { %6277 = vmatpush3.bf16.msra.mxu0 %v7209_v12  ;;  %6151 = vmatprep.subr.bf16.mxu1 %v6150_v16  ;;  %v1914_v34 = vld [vmem:[#allocation6 + $0x250] sm:$0xff]  ;;  %v356_v38 = vld [vmem:[#allocation6 + $0x60] sm:$0xff]  ;;  %v357_v39 = vld [vmem:[#allocation6 + $0x68] sm:$0xff] }
  0x65   : > { %6279 = vmatprep.subr.bf16.mxu0 %v7214_v17  ;;  %5744 = vmatprep.mubr.f32.mxu0 %v4714_v29  ;;  %v7228_v37 = vpack.c.bf16 %v1915_v35, %v1914_v34  ;;  %v1916_v40 = vld [vmem:[#allocation6 + $0x260] sm:$0xff]  ;;  %v1917_v41 = vld [vmem:[#allocation6 + $0x268] sm:$0xff]  ;;  %v6166_v42 = vpack.c.bf16 %v357_v39, %v356_v38  ;;  %v358_v44 = vld [vmem:[#allocation6 + $0x70] sm:$0xff] }
  0x66   : > { %v7232_v43 = vpack.c.bf16 %v1917_v41, %v1916_v40  ;;  %v359_v45 = vld [vmem:[#allocation6 + $0x78] sm:$0xff]  ;;  %v1918_v46 = vld [vmem:[#allocation6 + $0x270] sm:$0xff]  ;;  %v680_v50 = vld [vmem:[#allocation6 + $0x80] sm:$0xff] }
  0x67   : > { %6153 = vmatpush3.bf16.msra.mxu1 %v6150_v16  ;;  %v1919_v47 = vld [vmem:[#allocation6 + $0x278] sm:$0xff]  ;;  %v6170_v48 = vpack.c.bf16 %v359_v45, %v358_v44  ;;  %v681_v51 = vld [vmem:[#allocation6 + $0x88] sm:$0xff]  ;;  %v2312_v52 = vld [vmem:[#allocation6 + $0x280] sm:$0xff] }
  0x68   : > { %6281 = vmatpush3.bf16.msra.mxu0 %v7214_v17  ;;  %6155 = vmatprep.subr.bf16.mxu1 %v6154_v22  ;;  %v7236_v49 = vpack.c.bf16 %v1919_v47, %v1918_v46  ;;  %v2313_v53 = vld [vmem:[#allocation6 + $0x288] sm:$0xff]  ;;  %v6174_v54 = vpack.c.bf16 %v681_v51, %v680_v50  ;;  %v2314_v56 = vld [vmem:[#allocation6 + $0x290] sm:$0xff]  ;;  %v2315_v57 = vld [vmem:[#allocation6 + $0x298] sm:$0xff] }
  0x69   : > { %6283 = vmatprep.subr.bf16.mxu0 %v7218_v23  ;;  %v6302_v55 = vpack.c.bf16 %v2313_v53, %v2312_v52  ;;  %v309_v58 = vld [vmem:[%s7197_s14 + $0x8] sm:$0xff]  ;;  %v682_v59 = vld [vmem:[#allocation6 + $0x90] sm:$0xff]  ;;  %v310_v62 = vld [vmem:[%s7197_s14 + $0x10] sm:$0xff]  ;;  %v6306_v63 = vpack.c.bf16 %v2315_v57, %v2314_v56 }
  0x6a   : > { %v683_v60 = vld [vmem:[#allocation6 + $0x98] sm:$0xff]  ;;  %v2316_v2 = vld [vmem:[#allocation6 + $0x2a0] sm:$0xff]  ;;  %v2317_v3 = vld [vmem:[#allocation6 + $0x2a8] sm:$0xff] }
  0x6b   : > { %6157 = vmatpush3.bf16.msra.mxu1 %v6154_v22  ;;  %v4715_v61 = vld [vmem:[%s7197_s14 + $0x1b] sm:$0xff]  ;;  %v4716_v0 = vld [vmem:[%s7197_s14 + $0x23] sm:$0xff]  ;;  %v6178_v1 = vpack.c.bf16 %v683_v60, %v682_v59  ;;  %v4717_v8 = vld [vmem:[%s7197_s14 + $0x2b] sm:$0xff]  ;;  %v6310_v11 = vpack.c.bf16 %v2317_v3, %v2316_v2 }
  0x6c   : > { %6285 = vmatpush3.bf16.msra.mxu0 %v7218_v23  ;;  %6159 = vmatprep.subr.bf16.mxu1 %v6158_v30  ;;  %v311_v4 = vld [vmem:[%s7197_s14 + $0x18] sm:$0xff]  ;;  %v684_v5 = vld [vmem:[#allocation6 + $0xa0] sm:$0xff]  ;;  %v312_v9 = vld [vmem:[%s7197_s14 + $0x20] sm:$0xff] }
  0x6d   : > { %6287 = vmatprep.subr.bf16.mxu0 %v7224_v31  ;;  %v685_v6 = vld [vmem:[#allocation6 + $0xa8] sm:$0xff]  ;;  %v2318_v13 = vld [vmem:[#allocation6 + $0x2b0] sm:$0xff]  ;;  %v2319_v14 = vld [vmem:[#allocation6 + $0x2b8] sm:$0xff] }
  0x6e   : > { %v4718_v10 = vld [vmem:[%s7197_s14 + $0x33] sm:$0xff]  ;;  %v6182_v15 = vpack.c.bf16 %v685_v6, %v684_v5  ;;  %v313_v16 = vld [vmem:[%s7197_s14 + $0x28] sm:$0xff]  ;;  %v4719_v20 = vld [vmem:[%s7197_s14 + $0x3b] sm:$0xff]  ;;  %v6314_v24 = vpack.c.bf16 %v2319_v14, %v2318_v13 }
  0x6f   : > { %6161 = vmatpush3.bf16.msra.mxu1 %v6158_v30  ;;  %v686_v18 = vld [vmem:[#allocation6 + $0xb0] sm:$0xff]  ;;  %v687_v19 = vld [vmem:[#allocation6 + $0xb8] sm:$0xff]  ;;  %v314_v21 = vld [vmem:[%s7197_s14 + $0x30] sm:$0xff] }
  0x70   : > { %6289 = vmatpush3.bf16.msra.mxu0 %v7224_v31  ;;  %6163 = vmatprep.subr.bf16.mxu1 %v6162_v36  ;;  %v4720_v22 = vld [vmem:[%s7197_s14 + $0x43] sm:$0xff]  ;;  %v2321_v26 = vld [vmem:[#allocation6 + $0x2c8] sm:$0xff]  ;;  %v6186_v27 = vpack.c.bf16 %v687_v19, %v686_v18 }
  0x71   : > { %6291 = vmatprep.subr.bf16.mxu0 %v7228_v37  ;;  %v2320_v25 = vld [vmem:[#allocation6 + $0x2c0] sm:$0xff]  ;;  %v315_v28 = vld [vmem:[%s7197_s14 + $0x38] sm:$0xff]  ;;  %v316_v33 = vld [vmem:[%s7197_s14 + $0x40] sm:$0xff] }
  0x72   : > { %v688_v29 = vld [vmem:[#allocation6 + $0xc0] sm:$0xff]  ;;  %v689_v30 = vld [vmem:[#allocation6 + $0xc8] sm:$0xff]  ;;  %v6318_v35 = vpack.c.bf16 %v2321_v26, %v2320_v25  ;;  %v2323_v38 = vld [vmem:[#allocation6 + $0x2d8] sm:$0xff] }
  0x73   : > { %6165 = vmatpush3.bf16.msra.mxu1 %v6162_v36  ;;  %v4721_v32 = vld [vmem:[%s7197_s14 + $0x4b] sm:$0xff]  ;;  %v4722_v34 = vld [vmem:[%s7197_s14 + $0x53] sm:$0xff]  ;;  %v6190_v39 = vpack.c.bf16 %v689_v30, %v688_v29  ;;  %v4723_v44 = vld [vmem:[%s7197_s14 + $0x5b] sm:$0xff] }
  0x74   : > { %6293 = vmatpush3.bf16.msra.mxu0 %v7228_v37  ;;  %6167 = vmatprep.subr.bf16.mxu1 %v6166_v42  ;;  %v2322_v36 = vld [vmem:[#allocation6 + $0x2d0] sm:$0xff]  ;;  %v317_v40 = vld [vmem:[%s7197_s14 + $0x48] sm:$0xff]  ;;  %v318_v45 = vld [vmem:[%s7197_s14 + $0x50] sm:$0xff] }
  0x75   : > { %6295 = vmatprep.subr.bf16.mxu0 %v7232_v43  ;;  %v690_v41 = vld [vmem:[#allocation6 + $0xd0] sm:$0xff]  ;;  %v6322_v47 = vpack.c.bf16 %v2323_v38, %v2322_v36  ;;  %v2325_v50 = vld [vmem:[#allocation6 + $0x2e8] sm:$0xff]  ;;  %v692_v53 = vld [vmem:[#allocation6 + $0xe0] sm:$0xff] }
  0x76   : > { %v4724_v46 = vld [vmem:[%s7197_s14 + $0x63] sm:$0xff]  ;;  %v319_v52 = vld [vmem:[%s7197_s14 + $0x58] sm:$0xff]  ;;  %v322_v2 = vld [vmem:[%s7197_s14 + $0x70] sm:$0xff] }
  0x77   : > { %6169 = vmatpush3.bf16.msra.mxu1 %v6166_v42  ;;  %v691_v42 = vld [vmem:[#allocation6 + $0xd8] sm:$0xff]  ;;  %v4726_v57 = vld [vmem:[%s7197_s14 + $0x73] sm:$0xff] }
  0x78   : > { %6297 = vmatpush3.bf16.msra.mxu0 %v7232_v43  ;;  %6171 = vmatprep.subr.bf16.mxu1 %v6170_v48  ;;  %v6194_v51 = vpack.c.bf16 %v691_v42, %v690_v41  ;;  %v320_v56 = vld [vmem:[%s7197_s14 + $0x60] sm:$0xff]  ;;  %v2720_v5 = vld [vmem:[#allocation6 + $0x300] sm:$0xff]  ;;  %v2721_v6 = vld [vmem:[#allocation6 + $0x308] sm:$0xff] }
  0x79   : > { %6299 = vmatprep.subr.bf16.mxu0 %v7236_v49  ;;  %v2326_v59 = vld [vmem:[#allocation6 + $0x2f0] sm:$0xff]  ;;  %v2327_v60 = vld [vmem:[#allocation6 + $0x2f8] sm:$0xff]  ;;  %v330_v36 = vld [vmem:[%s7197_s14 + $0xb0] sm:$0xff] }
  0x7a   : > { %v4728_v3 = vld [vmem:[%s7197_s14 + $0x83] sm:$0xff]  ;;  %v4729_v13 = vld [vmem:[%s7197_s14 + $0x8b] sm:$0xff]  ;;  %v327_v26 = vld [vmem:[%s7197_s14 + $0x98] sm:$0xff] }
  0x7b   : > { %6173 = vmatpush3.bf16.msra.mxu1 %v6170_v48  ;;  %v2324_v48 = vld [vmem:[#allocation6 + $0x2e0] sm:$0xff]  ;;  %v324_v14 = vld [vmem:[%s7197_s14 + $0x80] sm:$0xff]  ;;  %v331_v42 = vld [vmem:[%s7197_s14 + $0xb8] sm:$0xff] }
  0x7c   : > { %6301 = vmatpush3.bf16.msra.mxu0 %v7236_v49  ;;  %6175 = vmatprep.subr.bf16.mxu1 %v6174_v54  ;;  %v325_v19 = vld [vmem:[%s7197_s14 + $0x88] sm:$0xff]  ;;  %v7293_v38 = vld [vmem:[%s7197_s14 + $0x34] sm:$0xff] }
  0x7d   : > { %6303 = vmatprep.subr.bf16.mxu0 %v6302_v55  ;;  %v2723_v25 = vld [vmem:[#allocation6 + $0x318] sm:$0xff] }
  0x7e   : > { %5401 = vmatmul.mubr.f32.vlgmr.msra.gmra.mrb[0].mxu1 %v309_v58  ;;  %v6326_v58 = vpack.c.bf16 %v2325_v50, %v2324_v48  ;;  %v7284_v29 = vld [vmem:[%s7197_s14 + $0x24] sm:$0xff]  ;;  %v2729_v50 = vld [vmem:[#allocation6 + $0x348] sm:$0xff] }
  0x7f   : > { %5745 = vmatmul.mubr.f32.vlgmr.msra.gmra.mrb[0].mxu0 %v4715_v61  ;;  %6177 = vmatpush3.bf16.msra.mxu1 %v6174_v54  ;;  %v693_v54 = vld [vmem:[#allocation6 + $0xe8] sm:$0xff]  ;;  %v2727_v41 = vld [vmem:[#allocation6 + $0x338] sm:$0xff]  ;;  %v2728_v48 = vld [vmem:[#allocation6 + $0x340] sm:$0xff] }
  0x80   : > { %6305 = vmatpush3.bf16.msra.mxu0 %v6302_v55  ;;  %5403 = vmatprep.mubr.f32.mxu1 %v310_v62  ;;  %v4725_v55 = vld [vmem:[%s7197_s14 + $0x6b] sm:$0xff]  ;;  %v6198_v61 = vpack.c.bf16 %v693_v54, %v692_v53  ;;  %v7313_v54 = vld [vmem:[%s7197_s14 + $0x54] sm:$0xff] }
  0x81   : > { %5747 = vmatprep.mubr.f32.mxu0 %v4716_v0  ;;  %6307 = vmatprep.subr.bf16.mxu0 %v6306_v63  ;;  %v321_v62 = vld [vmem:[%s7197_s14 + $0x68] sm:$0xff]  ;;  %v334_v53 = vld [vmem:[%s7197_s14 + $0xd0] sm:$0xff] }
  0x82   : > { %5404 = vmatmul.mubr.f32.gmra.mrb[2].mxu1 %v311_v4  ;;  %6179 = vmatprep.subr.bf16.mxu1 %v6178_v1  ;;  %v695_v0 = vld [vmem:[#allocation6 + $0xf8] sm:$0xff]  ;;  %v6330_v4 = vpack.c.bf16 %v2327_v60, %v2326_v59 }
  0x83   : > { %5748 = vmatmul.mubr.f32.gmra.mrb[2].mxu0 %v4717_v8  ;;  %5406 = vmatprep.mubr.f32.mxu1 %v312_v9  ;;  %v323_v9 = vld [vmem:[%s7197_s14 + $0x78] sm:$0xff]  ;;  %v336_v60 = vld [vmem:[%s7197_s14 + $0xe0] sm:$0xff] }
  0x84   : > { %6309 = vmatpush3.bf16.msra.mxu0 %v6306_v63  ;;  %5750 = vmatprep.mubr.f32.mxu0 %v4718_v10  ;;  %v694_v63 = vld [vmem:[#allocation6 + $0xf0] sm:$0xff]  ;;  %v1088_v10 = vld [vmem:[#allocation6 + $0x100] sm:$0xff] }
  0x85   : > { %6311 = vmatprep.subr.bf16.mxu0 %v6310_v11  ;;  %6181 = vmatpush3.bf16.msra.mxu1 %v6178_v1  ;;  %v4727_v1 = vld [vmem:[%s7197_s14 + $0x7b] sm:$0xff]  ;;  %v6202_v8 = vpack.c.bf16 %v695_v0, %v694_v63  ;;  %v2732_v63 = vld [vmem:[#allocation6 + $0x360] sm:$0xff] }
  0x86   : > { %5407 = vmatmul.mubr.f32.gmra.mrb[4].mxu1 %v313_v16  ;;  %6183 = vmatprep.subr.bf16.mxu1 %v6182_v15  ;;  %v6334_v16 = vpack.c.bf16 %v2721_v6, %v2720_v5  ;;  %v7319_v59 = vld [vmem:[%s7197_s14 + $0x5c] sm:$0xff] }
  0x87   : > { %5751 = vmatmul.mubr.f32.gmra.mrb[4].mxu0 %v4719_v20  ;;  %5409 = vmatprep.mubr.f32.mxu1 %v314_v21  ;;  %v4731_v20 = vld [vmem:[%s7197_s14 + $0x9b] sm:$0xff]  ;;  %v326_v21 = vld [vmem:[%s7197_s14 + $0x90] sm:$0xff] }
  0x88   : > { %6313 = vmatpush3.bf16.msra.mxu0 %v6310_v11  ;;  %5753 = vmatprep.mubr.f32.mxu0 %v4720_v22  ;;  %v1089_v11 = vld [vmem:[#allocation6 + $0x108] sm:$0xff]  ;;  %v2734_v6 = vld [vmem:[#allocation6 + $0x370] sm:$0xff] }
  0x89   : > { %6315 = vmatprep.subr.bf16.mxu0 %v6314_v24  ;;  %6185 = vmatpush3.bf16.msra.mxu1 %v6182_v15  ;;  %v4730_v15 = vld [vmem:[%s7197_s14 + $0x93] sm:$0xff]  ;;  %v7273_v18 = vpack.c.bf16 %v1089_v11, %v1088_v10  ;;  %v7339_v10 = vld [vmem:[%s7197_s14 + $0x7c] sm:$0xff] }
  0x8a   : > { %5410 = vmatmul.mubr.f32.gmra.mrb[6].mxu1 %v315_v28  ;;  %6187 = vmatprep.subr.bf16.mxu1 %v6186_v27  ;;  %v4750_v22 = vld [vmem:[%s7197_s14 + $0x14] sm:$0xff]  ;;  %v328_v28 = vld [vmem:[%s7197_s14 + $0xa0] sm:$0xff] }
  0x8b   : > { %5754 = vmatmul.mubr.f32.gmra.mrb[6].mxu0 %v4721_v32  ;;  %5412 = vmatprep.mubr.f32.mxu1 %v316_v33  ;;  %v2724_v32 = vld [vmem:[#allocation6 + $0x320] sm:$0xff]  ;;  %v2725_v33 = vld [vmem:[#allocation6 + $0x328] sm:$0xff]  ;;  %v340_v11 = vld [vmem:[%s7197_s14 + $0x100] sm:$0xff] }
  0x8c   : > { %5756 = vmatprep.mubr.f32.mxu0 %v4722_v34  ;;  %6317 = vmatpush3.bf16.msra.mxu0 %v6314_v24  ;;  %v2722_v24 = vld [vmem:[#allocation6 + $0x310] sm:$0xff]  ;;  %v329_v34 = vld [vmem:[%s7197_s14 + $0xa8] sm:$0xff]  ;;  %v2733_v0 = vld [vmem:[#allocation6 + $0x368] sm:$0xff] }
  0x8d   : > { %6319 = vmatprep.subr.bf16.mxu0 %v6318_v35  ;;  %6189 = vmatpush3.bf16.msra.mxu1 %v6186_v27  ;;  %v4751_v27 = vld [vmem:[%s7197_s14 + $0x1c] sm:$0xff]  ;;  %v6338_v30 = vpack.c.bf16 %v2723_v25, %v2722_v24  ;;  %v6358_v5 = vpack.c.bf16 %v2733_v0, %v2732_v63 }
  0x8e   : > { %5413 = vmatmul.mubr.f32.gmra.mrb[8].mxu1 %v317_v40  ;;  %6191 = vmatprep.subr.bf16.mxu1 %v6190_v39  ;;  %v2726_v40 = vld [vmem:[#allocation6 + $0x330] sm:$0xff]  ;;  %v1097_v63 = vld [vmem:[#allocation6 + $0x148] sm:$0xff] }
  0x8f   : > { %5757 = vmatmul.mubr.f32.gmra.mrb[8].mxu0 %v4723_v44  ;;  %5415 = vmatprep.mubr.f32.mxu1 %v318_v45  ;;  %v7299_v44 = vld [vmem:[%s7197_s14 + $0x3c] sm:$0xff] }
  0x90   : > { %5759 = vmatprep.mubr.f32.mxu0 %v4724_v46  ;;  %6321 = vmatpush3.bf16.msra.mxu0 %v6318_v35  ;;  %v7289_v35 = vld [vmem:[%s7197_s14 + $0x2c] sm:$0xff]  ;;  %v332_v45 = vld [vmem:[%s7197_s14 + $0xc0] sm:$0xff]  ;;  %v343_v25 = vld [vmem:[%s7197_s14 + $0x118] sm:$0xff] }
  0x91   : > { %6323 = vmatprep.subr.bf16.mxu0 %v6322_v47  ;;  %6193 = vmatpush3.bf16.msra.mxu1 %v6190_v39  ;;  %v6342_v39 = vpack.c.bf16 %v2725_v33, %v2724_v32  ;;  %v7303_v46 = vld [vmem:[%s7197_s14 + $0x44] sm:$0xff]  ;;  %v4613_v0 = vld [vmem:[%s7197_s14 + $0x39] sm:$0xff] }
  0x92   : > { %5416 = vmatmul.mubr.f32.gmra.mrb[10].mxu1 %v319_v52  ;;  %6195 = vmatprep.subr.bf16.mxu1 %v6194_v51  ;;  %v7309_v52 = vld [vmem:[%s7197_s14 + $0x4c] sm:$0xff] }
  0x93   : > { %5760 = vmatmul.mubr.f32.gmra.mrb[10].mxu0 %v4725_v55  ;;  %5418 = vmatprep.mubr.f32.mxu1 %v320_v56  ;;  %v6350_v55 = vpack.c.bf16 %v2729_v50, %v2728_v48  ;;  %v2730_v56 = vld [vmem:[#allocation6 + $0x350] sm:$0xff]  ;;  %v1091_v32 = vld [vmem:[#allocation6 + $0x118] sm:$0xff] }
  0x94   : > { %5762 = vmatprep.mubr.f32.mxu0 %v4726_v57  ;;  %6325 = vmatpush3.bf16.msra.mxu0 %v6322_v47  ;;  %v6346_v47 = vpack.c.bf16 %v2727_v41, %v2726_v40  ;;  %v2731_v57 = vld [vmem:[#allocation6 + $0x358] sm:$0xff]  ;;  %v1092_v41 = vld [vmem:[#allocation6 + $0x120] sm:$0xff] }
  0x95   : > { %6327 = vmatprep.subr.bf16.mxu0 %v6326_v58  ;;  %6197 = vmatpush3.bf16.msra.mxu1 %v6194_v51  ;;  %v333_v51 = vld [vmem:[%s7197_s14 + $0xc8] sm:$0xff] }
  0x96   : > { %5419 = vmatmul.mubr.f32.gmra.mrb[12].mxu1 %v321_v62  ;;  %6199 = vmatprep.subr.bf16.mxu1 %v6198_v61  ;;  %v6354_v62 = vpack.c.bf16 %v2731_v57, %v2730_v56  ;;  %v4607_v33 = vld [vmem:[%s7197_s14 + $0x9] sm:$0xff]  ;;  %v4610_v48 = vld [vmem:[%s7197_s14 + $0x21] sm:$0xff]  ;;  %v4612_v57 = vld [vmem:[%s7197_s14 + $0x31] sm:$0xff] }
  0x97   : > { %5763 = vmatmul.mubr.f32.gmra.mrb[12].mxu0 %v4727_v1  ;;  %5421 = vmatprep.mubr.f32.mxu1 %v322_v2  ;;  %v337_v1 = vld [vmem:[%s7197_s14 + $0xe8] sm:$0xff] }
  0x98   : > { %5765 = vmatprep.mubr.f32.mxu0 %v4728_v3  ;;  %6329 = vmatpush3.bf16.msra.mxu0 %v6326_v58  ;;  %v335_v58 = vld [vmem:[%s7197_s14 + $0xd8] sm:$0xff]  ;;  %v7329_v2 = vld [vmem:[%s7197_s14 + $0x6c] sm:$0xff]  ;;  %v7387_v50 = vld [vmem:[%s7197_s14 + $0xc4] sm:$0xff] }
  0x99   : > { %6331 = vmatprep.subr.bf16.mxu0 %v6330_v4  ;;  %6201 = vmatpush3.bf16.msra.mxu1 %v6198_v61  ;;  %v7323_v61 = vld [vmem:[%s7197_s14 + $0x64] sm:$0xff]  ;;  %v338_v3 = vld [vmem:[%s7197_s14 + $0xf0] sm:$0xff] }
  0x9a   : > { %5422 = vmatmul.mubr.f32.gmra.mrb[14].mxu1 %v323_v9  ;;  %6203 = vmatprep.subr.bf16.mxu1 %v6202_v8  ;;  %v339_v9 = vld [vmem:[%s7197_s14 + $0xf8] sm:$0xff]  ;;  %v7393_v56 = vld [vmem:[%s7197_s14 + $0xcc] sm:$0xff] }
  0x9b   : > { %5766 = vmatmul.mubr.f32.gmra.mrb[14].mxu0 %v4729_v13  ;;  %5424 = vmatprep.mubr.f32.mxu1 %v324_v14  ;;  %v7343_v13 = vld [vmem:[%s7197_s14 + $0x84] sm:$0xff] }
  0x9c   : > { %5768 = vmatprep.mubr.f32.mxu0 %v4730_v15  ;;  %6333 = vmatpush3.bf16.msra.mxu0 %v6330_v4  ;;  %v7333_v4 = vld [vmem:[%s7197_s14 + $0x74] sm:$0xff] }
  0x9d   : > { %6335 = vmatprep.subr.bf16.mxu0 %v6334_v16  ;;  %6205 = vmatpush3.bf16.msra.mxu1 %v6202_v8  ;;  %v2735_v8 = vld [vmem:[#allocation6 + $0x378] sm:$0xff]  ;;  %v3128_v15 = vld [vmem:[#allocation6 + $0x380] sm:$0xff] }
  0x9e   : > { %5425 = vmatmul.mubr.f32.gmra.mrb[16].mxu1 %v325_v19  ;;  %6207 = vmatprep.subr.bf16.mxu1 %v7273_v18  ;;  %v6362_v14 = vpack.c.bf16 %v2735_v8, %v2734_v6  ;;  %v341_v19 = vld [vmem:[%s7197_s14 + $0x108] sm:$0xff]  ;;  %v1098_v8 = vld [vmem:[#allocation6 + $0x150] sm:$0xff] }
  0x9f   : > { %5769 = vmatmul.mubr.f32.gmra.mrb[16].mxu0 %v4731_v20  ;;  %5427 = vmatprep.mubr.f32.mxu1 %v326_v21  ;;  %v7349_v20 = vld [vmem:[%s7197_s14 + $0x8c] sm:$0xff] }
  0xa0   : > { %5830 = vmatprep.mubr.f32.mxu0 %v4750_v22  ;;  %v342_v21 = vld [vmem:[%s7197_s14 + $0x110] sm:$0xff] }
  0xa1   : > { %v7353_v22 = vld [vmem:[%s7197_s14 + $0x94] sm:$0xff] }
  0xa2   : > { %5428 = vmatmul.mubr.f32.gmra.mrb[18].mxu1 %v327_v26  ;;  %v7361_v26 = vld [vmem:[%s7197_s14 + $0x9c] sm:$0xff] }
  0xa3   : > { %5831 = vmatmul.mubr.f32.vlgmr.msra.gmra.mrb[0].mxu0 %v4751_v27  ;;  %5430 = vmatprep.mubr.f32.mxu1 %v328_v28  ;;  %v4606_v27 = vld [vmem:[%s7197_s14 + $0x1] sm:$0xff] }
  0xa4   : > { %6337 = vmatpush3.bf16.msra.mxu0 %v6334_v16  ;;  %5833 = vmatprep.mubr.f32.mxu0 %v7284_v29  ;;  %v3129_v16 = vld [vmem:[#allocation6 + $0x388] sm:$0xff]  ;;  %v7365_v28 = vld [vmem:[%s7197_s14 + $0xa4] sm:$0xff] }
  0xa5   : > { %6339 = vmatprep.subr.bf16.mxu0 %v6338_v30  ;;  %v7355_v24 = vpack.c.bf16 %v3129_v16, %v3128_v15  ;;  %v4616_v15 = vld [vmem:[%s7197_s14 + $0x51] sm:$0xff] }
  0xa6   : > { %5431 = vmatmul.mubr.f32.gmra.mrb[20].mxu1 %v329_v34  ;;  %v7372_v34 = vld [vmem:[%s7197_s14 + $0xac] sm:$0xff]  ;;  %v7417_v16 = vld [vmem:[%s7197_s14 + $0xf4] sm:$0xff] }
  0xa7   : > { %5834 = vmatmul.mubr.f32.gmra.mrb[2].mxu0 %v7289_v35  ;;  %5433 = vmatprep.mubr.f32.mxu1 %v330_v36  ;;  %v4608_v36 = vld [vmem:[%s7197_s14 + $0x11] sm:$0xff] }
  0xa8   : > { %5836 = vmatprep.mubr.f32.mxu0 %v7293_v38  ;;  %6341 = vmatpush3.bf16.msra.mxu0 %v6338_v30  ;;  %v1090_v30 = vld [vmem:[#allocation6 + $0x110] sm:$0xff] }
  0xa9   : > { %6343 = vmatprep.subr.bf16.mxu0 %v6342_v39  ;;  %v6210_v40 = vpack.c.bf16 %v1091_v32, %v1090_v30  ;;  %v7423_v30 = vld [vmem:[%s7197_s14 + $0xfc] sm:$0xff] }
  0xaa   : > { %5434 = vmatmul.mubr.f32.gmra.mrb[22].mxu1 %v331_v42  ;;  %v1093_v42 = vld [vmem:[#allocation6 + $0x128] sm:$0xff]  ;;  %v4618_v32 = vld [vmem:[%s7197_s14 + $0x61] sm:$0xff] }
  0xab   : > { %5837 = vmatmul.mubr.f32.gmra.mrb[4].mxu0 %v7299_v44  ;;  %5436 = vmatprep.mubr.f32.mxu1 %v332_v45  ;;  %v4609_v45 = vld [vmem:[%s7197_s14 + $0x19] sm:$0xff] }
  0xac   : > { %5839 = vmatprep.mubr.f32.mxu0 %v7303_v46  ;;  %6345 = vmatpush3.bf16.msra.mxu0 %v6342_v39  ;;  %v7376_v39 = vld [vmem:[%s7197_s14 + $0xb4] sm:$0xff] }
  0xad   : > { %6347 = vmatprep.subr.bf16.mxu0 %v6346_v47 }
  0xae   : > { %5437 = vmatmul.mubr.f32.gmra.mrb[24].mxu1 %v333_v51  ;;  %v6214_v51 = vpack.c.bf16 %v1093_v42, %v1092_v41  ;;  %v1103_v41 = vld [vmem:[#allocation6 + $0x178] sm:$0xff] }
  0xaf   : > { %5840 = vmatmul.mubr.f32.gmra.mrb[6].mxu0 %v7309_v52  ;;  %5439 = vmatprep.mubr.f32.mxu1 %v334_v53  ;;  %v1094_v53 = vld [vmem:[#allocation6 + $0x130] sm:$0xff]  ;;  %v4619_v42 = vld [vmem:[%s7197_s14 + $0x69] sm:$0xff] }
  0xb0   : > { %5842 = vmatprep.mubr.f32.mxu0 %v7313_v54  ;;  %6349 = vmatpush3.bf16.msra.mxu0 %v6346_v47  ;;  %v7383_v47 = vld [vmem:[%s7197_s14 + $0xbc] sm:$0xff] }
  0xb1   : > { %6351 = vmatprep.subr.bf16.mxu0 %v6350_v55 }
  0xb2   : > { %5440 = vmatmul.mubr.f32.gmra.mrb[26].mxu1 %v335_v58  ;;  %v7397_v58 = vld [vmem:[%s7197_s14 + $0xd4] sm:$0xff] }
  0xb3   : > { %5843 = vmatmul.mubr.f32.gmra.mrb[8].mxu0 %v7319_v59  ;;  %5442 = vmatprep.mubr.f32.mxu1 %v336_v60 }
  0xb4   : > { %5845 = vmatprep.mubr.f32.mxu0 %v7323_v61  ;;  %6353 = vmatpush3.bf16.msra.mxu0 %v6350_v55  ;;  %v1095_v55 = vld [vmem:[#allocation6 + $0x138] sm:$0xff] }
  0xb5   : > { %6355 = vmatprep.subr.bf16.mxu0 %v6354_v62  ;;  %v6218_v60 = vpack.c.bf16 %v1095_v55, %v1094_v53  ;;  %v1496_v55 = vld [vmem:[#allocation6 + $0x180] sm:$0xff] }
  0xb6   : > { %5443 = vmatmul.mubr.f32.gmra.mrb[28].mxu1 %v337_v1  ;;  %v7403_v1 = vld [vmem:[%s7197_s14 + $0xdc] sm:$0xff] }
  0xb7   : > { %5846 = vmatmul.mubr.f32.gmra.mrb[10].mxu0 %v7329_v2  ;;  %5445 = vmatprep.mubr.f32.mxu1 %v338_v3  ;;  %v4614_v3 = vld [vmem:[%s7197_s14 + $0x41] sm:$0xff] }
  0xb8   : > { %5848 = vmatprep.mubr.f32.mxu0 %v7333_v4  ;;  %6357 = vmatpush3.bf16.msra.mxu0 %v6354_v62  ;;  %v1096_v62 = vld [vmem:[#allocation6 + $0x140] sm:$0xff] }
  0xb9   : > { %6359 = vmatprep.subr.bf16.mxu0 %v6358_v5  ;;  %v6222_v6 = vpack.c.bf16 %v1097_v63, %v1096_v62  ;;  %v4622_v62 = vld [vmem:[%s7197_s14 + $0x81] sm:$0xff] }
  0xba   : > { %5446 = vmatmul.mubr.f32.gmra.mrb[30].mxu1 %v339_v9  ;;  %v1099_v9 = vld [vmem:[#allocation6 + $0x158] sm:$0xff] }
  0xbb   : > { %5849 = vmatmul.mubr.f32.gmra.mrb[12].mxu0 %v7339_v10  ;;  %5448 = vmatprep.mubr.f32.mxu1 %v340_v11  ;;  %v4615_v11 = vld [vmem:[%s7197_s14 + $0x49] sm:$0xff] }
  0xbc   : > { %5851 = vmatprep.mubr.f32.mxu0 %v7343_v13  ;;  %6361 = vmatpush3.bf16.msra.mxu0 %v6358_v5  ;;  %v7407_v5 = vld [vmem:[%s7197_s14 + $0xe4] sm:$0xff] }
  0xbd   : > { %6363 = vmatprep.subr.bf16.mxu0 %v6362_v14  ;;  %v7447_v63 = vld [vmem:[%s7197_s14 + $0x124] sm:$0xff] }
  0xbe   : > { %5449 = vmatmul.mubr.f32.gmra.mrb[32].mxu1 %v341_v19  ;;  %v6226_v19 = vpack.c.bf16 %v1099_v9, %v1098_v8  ;;  %v4624_v8 = vld [vmem:[%s7197_s14 + $0x91] sm:$0xff] }
  0xbf   : > { %5852 = vmatmul.mubr.f32.gmra.mrb[14].mxu0 %v7349_v20  ;;  %5451 = vmatprep.mubr.f32.mxu1 %v342_v21  ;;  %v1100_v21 = vld [vmem:[#allocation6 + $0x160] sm:$0xff]  ;;  %v3130_v9 = vld [vmem:[#allocation6 + $0x390] sm:$0xff] }
  0xc0   : > { %5854 = vmatprep.mubr.f32.mxu0 %v7353_v22  ;;  %6365 = vmatpush3.bf16.msra.mxu0 %v6362_v14  ;;  %v7413_v14 = vld [vmem:[%s7197_s14 + $0xec] sm:$0xff] }
  0xc1   : > { %6367 = vmatprep.subr.bf16.mxu0 %v7355_v24 }
  0xc2   : > { %5452 = vmatmul.mubr.f32.gmra.mrb[34].mxu1 %v343_v25  ;;  %v1101_v25 = vld [vmem:[#allocation6 + $0x168] sm:$0xff] }
  0xc3   : > { %5855 = vmatmul.mubr.f32.gmra.mrb[16].mxu0 %v7361_v26  ;;  %5486 = vmatprep.mubr.f32.mxu1 %v4606_v27  ;;  %v4617_v27 = vld [vmem:[%s7197_s14 + $0x59] sm:$0xff] }
  0xc4   : > { %5857 = vmatprep.mubr.f32.mxu0 %v7365_v28 }
  0xc6   : > { %5487 = vmatmul.mubr.f32.vlgmr.msra.gmra.mrb[0].mxu1 %v4607_v33  ;;  %v7427_v33 = vld [vmem:[%s7197_s14 + $0x104] sm:$0xff] }
  0xc7   : > { %5858 = vmatmul.mubr.f32.gmra.mrb[18].mxu0 %v7372_v34  ;;  %6209 = vmatpush3.bf16.msra.mxu1 %v7273_v18  ;;  %v4611_v18 = vld [vmem:[%s7197_s14 + $0x29] sm:$0xff] }
  0xc8   : > { %5489 = vmatprep.mubr.f32.mxu1 %v4608_v36  ;;  %5860 = vmatprep.mubr.f32.mxu0 %v7376_v39  ;;  %v6230_v36 = vpack.c.bf16 %v1101_v25, %v1100_v21  ;;  %v3132_v25 = vld [vmem:[#allocation6 + $0x3a0] sm:$0xff] }
  0xc9   : > { %6211 = vmatprep.subr.bf16.mxu1 %v6210_v40 }
  0xca   : > { %5490 = vmatmul.mubr.f32.gmra.mrb[2].mxu1 %v4609_v45  ;;  %v7433_v45 = vld [vmem:[%s7197_s14 + $0x10c] sm:$0xff] }
  0xcb   : > { %5861 = vmatmul.mubr.f32.gmra.mrb[20].mxu0 %v7383_v47  ;;  %5492 = vmatprep.mubr.f32.mxu1 %v4610_v48  ;;  %v4620_v48 = vld [vmem:[%s7197_s14 + $0x71] sm:$0xff] }
  0xcc   : > { %5863 = vmatprep.mubr.f32.mxu0 %v7387_v50  ;;  %6213 = vmatpush3.bf16.msra.mxu1 %v6210_v40  ;;  %v1102_v40 = vld [vmem:[#allocation6 + $0x170] sm:$0xff] }
  0xcd   : > { %6215 = vmatprep.subr.bf16.mxu1 %v6214_v51  ;;  %v6234_v53 = vpack.c.bf16 %v1103_v41, %v1102_v40  ;;  %v3135_v41 = vld [vmem:[#allocation6 + $0x3b8] sm:$0xff] }
  0xce   : > { %5493 = vmatmul.mubr.f32.gmra.mrb[4].mxu1 %v4611_v18  ;;  %v1497_v18 = vld [vmem:[#allocation6 + $0x188] sm:$0xff] }
  0xcf   : > { %5864 = vmatmul.mubr.f32.gmra.mrb[22].mxu0 %v7393_v56  ;;  %5495 = vmatprep.mubr.f32.mxu1 %v4612_v57  ;;  %v4621_v57 = vld [vmem:[%s7197_s14 + $0x79] sm:$0xff] }
  0xd0   : > { %5866 = vmatprep.mubr.f32.mxu0 %v7397_v58  ;;  %6217 = vmatpush3.bf16.msra.mxu1 %v6214_v51  ;;  %v7437_v51 = vld [vmem:[%s7197_s14 + $0x114] sm:$0xff] }
  0xd1   : > { %6219 = vmatprep.subr.bf16.mxu1 %v6218_v60 }
  0xd2   : > { %5496 = vmatmul.mubr.f32.gmra.mrb[6].mxu1 %v4613_v0  ;;  %v7449_v0 = vpack.c.bf16 %v1497_v18, %v1496_v55  ;;  %v3139_v18 = vld [vmem:[#allocation6 + $0x3d8] sm:$0xff] }
  0xd3   : > { %5867 = vmatmul.mubr.f32.gmra.mrb[24].mxu0 %v7403_v1  ;;  %5498 = vmatprep.mubr.f32.mxu1 %v4614_v3  ;;  %v4623_v3 = vld [vmem:[%s7197_s14 + $0x89] sm:$0xff] }
  0xd4   : > { %5869 = vmatprep.mubr.f32.mxu0 %v7407_v5  ;;  %6221 = vmatpush3.bf16.msra.mxu1 %v6218_v60  ;;  %v7443_v60 = vld [vmem:[%s7197_s14 + $0x11c] sm:$0xff] }
  0xd5   : > { %6223 = vmatprep.subr.bf16.mxu1 %v6222_v6 }
  0xd6   : > { %5499 = vmatmul.mubr.f32.gmra.mrb[8].mxu1 %v4615_v11  ;;  %v3131_v11 = vld [vmem:[#allocation6 + $0x398] sm:$0xff] }
  0xd7   : > { %5870 = vmatmul.mubr.f32.gmra.mrb[26].mxu0 %v7413_v14  ;;  %5501 = vmatprep.mubr.f32.mxu1 %v4616_v15  ;;  %v4625_v15 = vld [vmem:[%s7197_s14 + $0x99] sm:$0xff]  ;;  %v6370_v21 = vpack.c.bf16 %v3131_v11, %v3130_v9 }
  0xd8   : > { %5872 = vmatprep.mubr.f32.mxu0 %v7417_v16  ;;  %6225 = vmatpush3.bf16.msra.mxu1 %v6222_v6  ;;  %v7455_v6 = vld [vmem:[%s7197_s14 + $0x12c] sm:$0xff] }
  0xd9   : > { %6227 = vmatprep.subr.bf16.mxu1 %v6226_v19  ;;  %v3143_v11 = vld [vmem:[#allocation6 + $0x3f8] sm:$0xff] }
  0xda   : > { %5502 = vmatmul.mubr.f32.gmra.mrb[10].mxu1 %v4617_v27  ;;  %v3133_v27 = vld [vmem:[#allocation6 + $0x3a8] sm:$0xff] }
  0xdb   : > { %5873 = vmatmul.mubr.f32.gmra.mrb[28].mxu0 %v7423_v30  ;;  %5504 = vmatprep.mubr.f32.mxu1 %v4618_v32  ;;  %v4627_v32 = vld [vmem:[%s7197_s14 + $0xa9] sm:$0xff]  ;;  %v6374_v40 = vpack.c.bf16 %v3133_v27, %v3132_v25  ;;  %v4641_v27 = vld [vmem:[%s7197_s14 + $0x119] sm:$0xff] }
  0xdc   : > { %5875 = vmatprep.mubr.f32.mxu0 %v7427_v33  ;;  %6229 = vmatpush3.bf16.msra.mxu1 %v6226_v19  ;;  %v4626_v19 = vld [vmem:[%s7197_s14 + $0xa1] sm:$0xff]  ;;  %v4639_v25 = vld [vmem:[%s7197_s14 + $0x109] sm:$0xff] }
  0xdd   : > { %6231 = vmatprep.subr.bf16.mxu1 %v6230_v36 }
  0xde   : > { %5505 = vmatmul.mubr.f32.gmra.mrb[12].mxu1 %v4619_v42  ;;  %v4629_v42 = vld [vmem:[%s7197_s14 + $0xb9] sm:$0xff] }
  0xdf   : > { %5876 = vmatmul.mubr.f32.gmra.mrb[30].mxu0 %v7433_v45  ;;  %5507 = vmatprep.mubr.f32.mxu1 %v4620_v48  ;;  %v3137_v48 = vld [vmem:[#allocation6 + $0x3c8] sm:$0xff] }
  0xe0   : > { %5878 = vmatprep.mubr.f32.mxu0 %v7437_v51  ;;  %6233 = vmatpush3.bf16.msra.mxu1 %v6230_v36  ;;  %v4628_v36 = vld [vmem:[%s7197_s14 + $0xb1] sm:$0xff] }
  0xe1   : > { %6235 = vmatprep.subr.bf16.mxu1 %v6234_v53 }
  0xe2   : > { %5508 = vmatmul.mubr.f32.gmra.mrb[14].mxu1 %v4621_v57  ;;  %v4633_v57 = vld [vmem:[%s7197_s14 + $0xd9] sm:$0xff] }
  0xe3   : > { %5879 = vmatmul.mubr.f32.gmra.mrb[32].mxu0 %v7443_v60  ;;  %5510 = vmatprep.mubr.f32.mxu1 %v4622_v62 }
  0xe4   : > { %5881 = vmatprep.mubr.f32.mxu0 %v7447_v63  ;;  %6237 = vmatpush3.bf16.msra.mxu1 %v6234_v53  ;;  %v4631_v53 = vld [vmem:[%s7197_s14 + $0xc9] sm:$0xff] }
  0xe5   : > { %6239 = vmatprep.subr.bf16.mxu1 %v7449_v0 }
  0xe6   : > { %5511 = vmatmul.mubr.f32.gmra.mrb[16].mxu1 %v4623_v3  ;;  %v3141_v3 = vld [vmem:[#allocation6 + $0x3e8] sm:$0xff] }
  0xe7   : > { %5882 = vmatmul.mubr.f32.gmra.mrb[34].mxu0 %v7455_v6  ;;  %5513 = vmatprep.mubr.f32.mxu1 %v4624_v8  ;;  %v4635_v8 = vld [vmem:[%s7197_s14 + $0xe9] sm:$0xff] }
  0xe8   : > { %5916 = vmatprep.mubr.f32.mxu0 %v7284_v29  ;;  %v3134_v29 = vld [vmem:[#allocation6 + $0x3b0] sm:$0xff] }
  0xea   : > { %5514 = vmatmul.mubr.f32.gmra.mrb[18].mxu1 %v4625_v15  ;;  %v4637_v15 = vld [vmem:[%s7197_s14 + $0xf9] sm:$0xff] }
  0xeb   : > { %5917 = vmatmul.mubr.f32.vlgmr.msra.gmra.mrb[0].mxu0 %v7289_v35  ;;  %5516 = vmatprep.mubr.f32.mxu1 %v4626_v19  ;;  %v4630_v35 = vld [vmem:[%s7197_s14 + $0xc1] sm:$0xff] }
  0xec   : > { %6369 = vmatpush3.bf16.msra.mxu0 %v7355_v24  ;;  %5919 = vmatprep.mubr.f32.mxu0 %v7293_v38  ;;  %v6378_v24 = vpack.c.bf16 %v3135_v41, %v3134_v29  ;;  %v3136_v38 = vld [vmem:[#allocation6 + $0x3c0] sm:$0xff] }
  0xed   : > { %6371 = vmatprep.subr.bf16.mxu0 %v6370_v21  ;;  %v6382_v55 = vpack.c.bf16 %v3137_v48, %v3136_v38  ;;  %v3536_v19 = vld [vmem:[#allocation6 + $0x400] sm:$0xff]  ;;  %v1503_v38 = vld [vmem:[#allocation6 + $0x1b8] sm:$0xff] }
  0xee   : > { %5517 = vmatmul.mubr.f32.gmra.mrb[20].mxu1 %v4627_v32  ;;  %v4642_v32 = vld [vmem:[%s7197_s14 + $0x2] sm:$0xff]  ;;  %v7532_v48 = vld [vmem:[%s7197_s14 + $0x32] sm:$0xff] }
  0xef   : > { %5920 = vmatmul.mubr.f32.gmra.mrb[2].mxu0 %v7299_v44  ;;  %5519 = vmatprep.mubr.f32.mxu1 %v4628_v36  ;;  %v4632_v44 = vld [vmem:[%s7197_s14 + $0xd1] sm:$0xff] }
  0xf0   : > { %5922 = vmatprep.mubr.f32.mxu0 %v7303_v46  ;;  %6373 = vmatpush3.bf16.msra.mxu0 %v6370_v21  ;;  %v3138_v46 = vld [vmem:[#allocation6 + $0x3d0] sm:$0xff]  ;;  %v3537_v21 = vld [vmem:[#allocation6 + $0x408] sm:$0xff]  ;;  %v1500_v41 = vld [vmem:[#allocation6 + $0x1a0] sm:$0xff] }
  0xf1   : > { %6375 = vmatprep.subr.bf16.mxu0 %v6374_v40  ;;  %v6386_v62 = vpack.c.bf16 %v3139_v18, %v3138_v46  ;;  %v4643_v36 = vld [vmem:[%s7197_s14 + $0xa] sm:$0xff]  ;;  %v7548_v18 = vld [vmem:[%s7197_s14 + $0x42] sm:$0xff] }
  0xf2   : > { %5520 = vmatmul.mubr.f32.gmra.mrb[22].mxu1 %v4629_v42  ;;  %v7516_v42 = vld [vmem:[%s7197_s14 + $0x22] sm:$0xff]  ;;  %v1505_v46 = vld [vmem:[#allocation6 + $0x1c8] sm:$0xff] }
  0xf3   : > { %5923 = vmatmul.mubr.f32.gmra.mrb[4].mxu0 %v7309_v52  ;;  %5522 = vmatprep.mubr.f32.mxu1 %v4630_v35  ;;  %v4634_v52 = vld [vmem:[%s7197_s14 + $0xe1] sm:$0xff] }
  0xf4   : > { %5925 = vmatprep.mubr.f32.mxu0 %v7313_v54  ;;  %6377 = vmatpush3.bf16.msra.mxu0 %v6374_v40  ;;  %v3140_v54 = vld [vmem:[#allocation6 + $0x3e0] sm:$0xff] }
  0xf5   : > { %6379 = vmatprep.subr.bf16.mxu0 %v6378_v24  ;;  %v6390_v9 = vpack.c.bf16 %v3141_v3, %v3140_v54  ;;  %v7506_v40 = vld [vmem:[%s7197_s14 + $0x12] sm:$0xff]  ;;  %v1507_v54 = vld [vmem:[#allocation6 + $0x1d8] sm:$0xff] }
  0xf6   : > { %5523 = vmatmul.mubr.f32.gmra.mrb[24].mxu1 %v4631_v53  ;;  %v3986_v35 = vld [vmem:[%s8167_s3 + $0x10] sm:$0xff]  ;;  %v3987_v53 = vld [vmem:[%s8167_s3 + $0x18] sm:$0xff] }
  0xf7   : > { %5926 = vmatmul.mubr.f32.gmra.mrb[6].mxu0 %v7319_v59  ;;  %5525 = vmatprep.mubr.f32.mxu1 %v4632_v44  ;;  %v4636_v59 = vld [vmem:[%s7197_s14 + $0xf1] sm:$0xff] }
  0xf8   : > { %5928 = vmatprep.mubr.f32.mxu0 %v7323_v61  ;;  %6381 = vmatpush3.bf16.msra.mxu0 %v6378_v24  ;;  %v3142_v61 = vld [vmem:[#allocation6 + $0x3f0] sm:$0xff] }
  0xf9   : > { %6383 = vmatprep.subr.bf16.mxu0 %v6382_v55  ;;  %v1502_v24 = vld [vmem:[#allocation6 + $0x1b0] sm:$0xff] }
  0xfa   : > { %5526 = vmatmul.mubr.f32.gmra.mrb[26].mxu1 %v4633_v57  ;;  %v3988_v44 = vld [vmem:[%s8167_s3 + $0x20] sm:$0xff]  ;;  %v3989_v57 = vld [vmem:[%s8167_s3 + $0x28] sm:$0xff] }
  0xfb   : > { %5929 = vmatmul.mubr.f32.gmra.mrb[8].mxu0 %v7329_v2  ;;  %5528 = vmatprep.mubr.f32.mxu1 %v4634_v52  ;;  %v4638_v2 = vld [vmem:[%s7197_s14 + $0x101] sm:$0xff]  ;;  %v7564_v3 = vld [vmem:[%s7197_s14 + $0x52] sm:$0xff] }
  0xfc   : > { %5931 = vmatprep.mubr.f32.mxu0 %v7333_v4  ;;  %6385 = vmatpush3.bf16.msra.mxu0 %v6382_v55  ;;  %v6394_v4 = vpack.c.bf16 %v3143_v11, %v3142_v61  ;;  %v1504_v55 = vld [vmem:[#allocation6 + $0x1c0] sm:$0xff]  ;;  %v1509_v61 = vld [vmem:[#allocation6 + $0x1e8] sm:$0xff] }
  0xfd   : > { %6387 = vmatprep.subr.bf16.mxu0 %v6386_v62  ;;  %v3990_v52 = vld [vmem:[%s8167_s3 + $0x30] sm:$0xff] }
  0xfe   : > { %5529 = vmatmul.mubr.f32.gmra.mrb[28].mxu1 %v4635_v8  ;;  %v3991_v8 = vld [vmem:[%s8167_s3 + $0x38] sm:$0xff]  ;;  %v7580_v11 = vld [vmem:[%s7197_s14 + $0x62] sm:$0xff] }
  0xff   : > { %5932 = vmatmul.mubr.f32.gmra.mrb[10].mxu0 %v7339_v10  ;;  %5531 = vmatprep.mubr.f32.mxu1 %v4636_v59  ;;  %v4640_v10 = vld [vmem:[%s7197_s14 + $0x111] sm:$0xff] }
 0x100   : > { %5934 = vmatprep.mubr.f32.mxu0 %v7343_v13  ;;  %6389 = vmatpush3.bf16.msra.mxu0 %v6386_v62  ;;  %v7492_v13 = vpack.c.bf16 %v3537_v21, %v3536_v19  ;;  %v1506_v62 = vld [vmem:[#allocation6 + $0x1d0] sm:$0xff]  ;;  %v1511_v19 = vld [vmem:[#allocation6 + $0x1f8] sm:$0xff] }
 0x101   : > { %6391 = vmatprep.subr.bf16.mxu0 %v6390_v9  ;;  %v3992_v59 = vld [vmem:[%s8167_s3 + $0x40] sm:$0xff] }
 0x102   : > { %5532 = vmatmul.mubr.f32.gmra.mrb[30].mxu1 %v4637_v15  ;;  %v3993_v15 = vld [vmem:[%s8167_s3 + $0x48] sm:$0xff]  ;;  %v7596_v21 = vld [vmem:[%s7197_s14 + $0x72] sm:$0xff] }
 0x103   : > { %5935 = vmatmul.mubr.f32.gmra.mrb[12].mxu0 %v7349_v20  ;;  %5534 = vmatprep.mubr.f32.mxu1 %v4638_v2  ;;  %v1498_v20 = vld [vmem:[#allocation6 + $0x190] sm:$0xff]  ;;  %v3994_v2 = vld [vmem:[%s8167_s3 + $0x50] sm:$0xff] }
 0x104   : > { %5937 = vmatprep.mubr.f32.mxu0 %v7353_v22  ;;  %6393 = vmatpush3.bf16.msra.mxu0 %v6390_v9  ;;  %v1499_v22 = vld [vmem:[#allocation6 + $0x198] sm:$0xff]  ;;  %v1508_v9 = vld [vmem:[#allocation6 + $0x1e0] sm:$0xff] }
 0x105   : > { %6395 = vmatprep.subr.bf16.mxu0 %v6394_v4  ;;  %v6242_v29 = vpack.c.bf16 %v1499_v22, %v1498_v20  ;;  %v4820_v20 = vld [vmem:[%s7197_s14 + $0x134] sm:$0xff]  ;;  %v4821_v22 = vld [vmem:[%s7197_s14 + $0x13c] sm:$0xff] }
 0x106   : > { %5535 = vmatmul.mubr.f32.gmra.mrb[32].mxu1 %v4639_v25  ;;  %v3995_v25 = vld [vmem:[%s8167_s3 + $0x58] sm:$0xff] }
 0x107   : > { %5938 = vmatmul.mubr.f32.gmra.mrb[14].mxu0 %v7361_v26  ;;  %5537 = vmatprep.mubr.f32.mxu1 %v4640_v10  ;;  %v7006_v26 = vmov 0   ;;  %v3996_v10 = vld [vmem:[%s8167_s3 + $0x60] sm:$0xff] }
 0x108   : > { %5940 = vmatprep.mubr.f32.mxu0 %v7365_v28  ;;  %6397 = vmatpush3.bf16.msra.mxu0 %v6394_v4  ;;  %v3984_v28 = vld [vmem:[%s8167_s3] sm:$0xff] }
 0x109   : > { %6399 = vmatprep.subr.bf16.mxu0 %v7492_v13  ;;  %6822 = vset.pattern.permute.xlu0 %v7006_v26  ;;  %v1510_v4 = vld [vmem:[#allocation6 + $0x1f0] sm:$0xff] }
 0x10a   : > { %5538 = vmatmul.mubr.f32.gmra.mrb[34].mxu1 %v4641_v27  ;;  %4022 = vperm.xlu0 %6822, %v3984_v28   ;;  %v7612_v27 = vld [vmem:[%s7197_s14 + $0x82] sm:$0xff] }
 0x10b   : > { %5941 = vmatmul.mubr.f32.gmra.mrb[16].mxu0 %v7372_v34  ;;  %5572 = vmatprep.mubr.f32.mxu1 %v4642_v32  ;;  %v1501_v34 = vld [vmem:[#allocation6 + $0x1a8] sm:$0xff]  ;;  %v3997_v32 = vld [vmem:[%s8167_s3 + $0x68] sm:$0xff] }
 0x10c   : > { %5943 = vmatprep.mubr.f32.mxu0 %v7376_v39  ;;  %6823 = vset.pattern.permute.xlu1 %v7006_v26  ;;  %v7511_v39 = vld [vmem:[%s7197_s14 + $0x1a] sm:$0xff]  ;;  %v4822_v28 = vld [vmem:[%s7197_s14 + $0x25] sm:$0xff] }
 0x10d   : > { %4032 = vperm.xlu1 %6823, %v3986_v35   ;;  %v3999_v26 = vld [vmem:[%s8167_s3 + $0x78] sm:$0xff] }
 0x10e   : > { %5573 = vmatmul.mubr.f32.vlgmr.msra.gmra.mrb[0].mxu1 %v4643_v36  ;;  %v7629_v36 = vld [vmem:[%s7197_s14 + $0x92] sm:$0xff] }
 0x10f   : > { %5944 = vmatmul.mubr.f32.gmra.mrb[18].mxu0 %v7383_v47  ;;  %6241 = vmatpush3.bf16.msra.mxu1 %v7449_v0  ;;  %v3985_v47 = vld [vmem:[%s8167_s3 + $0x8] sm:$0xff]  ;;  %v6246_v0 = vpack.c.bf16 %v1501_v34, %v1500_v41 }
 0x110   : > { %5575 = vmatprep.mubr.f32.mxu1 %v7506_v40  ;;  %5946 = vmatprep.mubr.f32.mxu0 %v7387_v50  ;;  %v7528_v50 = vld [vmem:[%s7197_s14 + $0x2a] sm:$0xff]  ;;  %v7642_v34 = vld [vmem:[%s7197_s14 + $0x9a] sm:$0xff] }
 0x111   : > { %6243 = vmatprep.subr.bf16.mxu1 %v6242_v29  ;;  %4027 = vperm.xlu0 %6822, %v3985_v47   ;;  %v3539_v41 = vld [vmem:[#allocation6 + $0x418] sm:$0xff] }
 0x112   : > { %5576 = vmatmul.mubr.f32.gmra.mrb[2].mxu1 %v7511_v39  ;;  %4037 = vperm.xlu1 %6823, %v3987_v53   ;;  %v4823_v35 = vld [vmem:[%s7197_s14 + $0x2d] sm:$0xff]  ;;  %v7646_v47 = vld [vmem:[%s7197_s14 + $0xa2] sm:$0xff] }
 0x113   : > { %5947 = vmatmul.mubr.f32.gmra.mrb[20].mxu0 %v7393_v56  ;;  %5578 = vmatprep.mubr.f32.mxu1 %v7516_v42  ;;  %v6250_v56 = vpack.c.bf16 %v1503_v38, %v1502_v24  ;;  %v4002_v24 = vld [vmem:[%s8167_s3 + $0x90] sm:$0xff] }
 0x114   : > { %5949 = vmatprep.mubr.f32.mxu0 %v7397_v58  ;;  %6245 = vmatpush3.bf16.msra.mxu1 %v6242_v29  ;;  %v7544_v58 = vld [vmem:[%s7197_s14 + $0x3a] sm:$0xff] }
 0x115   : > { %6247 = vmatprep.subr.bf16.mxu1 %v6246_v0  ;;  %4042 = vperm.xlu0 %6822, %v3988_v44   ;;  %v3538_v29 = vld [vmem:[#allocation6 + $0x410] sm:$0xff]  ;;  %v3540_v44 = vld [vmem:[#allocation6 + $0x420] sm:$0xff] }
 0x116   : > { %5579 = vmatmul.mubr.f32.gmra.mrb[4].mxu1 %v7528_v50  ;;  %4047 = vperm.xlu1 %6823, %v3989_v57   ;;  %v4824_v38 = vld [vmem:[%s7197_s14 + $0x35] sm:$0xff]  ;;  %v6402_v53 = vpack.c.bf16 %v3539_v41, %v3538_v29  ;;  %v4009_v29 = vld [vmem:[%s8167_s3 + $0xc8] sm:$0xff] }
 0x117   : > { %5950 = vmatmul.mubr.f32.gmra.mrb[22].mxu0 %v7403_v1  ;;  %5581 = vmatprep.mubr.f32.mxu1 %v7532_v48  ;;  %v6254_v1 = vpack.c.bf16 %v1505_v46, %v1504_v55  ;;  %v7658_v55 = vld [vmem:[%s7197_s14 + $0xaa] sm:$0xff]  ;;  %v4825_v46 = vld [vmem:[%s7197_s14 + $0x3d] sm:$0xff]  ;;  %v7663_v57 = vld [vmem:[%s7197_s14 + $0xb2] sm:$0xff] }
 0x118   : > { %5952 = vmatprep.mubr.f32.mxu0 %v7407_v5  ;;  %6249 = vmatpush3.bf16.msra.mxu1 %v6246_v0  ;;  %v7560_v5 = vld [vmem:[%s7197_s14 + $0x4a] sm:$0xff] }
 0x119   : > { %6251 = vmatprep.subr.bf16.mxu1 %v6250_v56  ;;  %4052 = vperm.xlu0 %6822, %v3990_v52   ;;  %v4001_v0 = vld [vmem:[%s8167_s3 + $0x88] sm:$0xff]  ;;  %v4003_v52 = vld [vmem:[%s8167_s3 + $0x98] sm:$0xff]  ;;  %v4010_v41 = vld [vmem:[%s8167_s3 + $0xd0] sm:$0xff] }
 0x11a   : > { %5582 = vmatmul.mubr.f32.gmra.mrb[6].mxu1 %v7544_v58  ;;  %4057 = vperm.xlu1 %6823, %v3991_v8   ;;  %v3543_v8 = vld [vmem:[#allocation6 + $0x438] sm:$0xff] }
 0x11b   : > { %5953 = vmatmul.mubr.f32.gmra.mrb[24].mxu0 %v7413_v14  ;;  %5584 = vmatprep.mubr.f32.mxu1 %v7548_v18  ;;  %v6258_v14 = vpack.c.bf16 %v1507_v54, %v1506_v62  ;;  %v4826_v62 = vld [vmem:[%s7197_s14 + $0x45] sm:$0xff] }
 0x11c   : > { %5955 = vmatprep.mubr.f32.mxu0 %v7417_v16  ;;  %6253 = vmatpush3.bf16.msra.mxu1 %v6250_v56  ;;  %v7576_v16 = vld [vmem:[%s7197_s14 + $0x5a] sm:$0xff] }
 0x11d   : > { %6255 = vmatprep.subr.bf16.mxu1 %v6254_v1  ;;  %4062 = vperm.xlu0 %6822, %v3992_v59   ;;  %v3541_v56 = vld [vmem:[#allocation6 + $0x428] sm:$0xff] }
 0x11e   : > { %5585 = vmatmul.mubr.f32.gmra.mrb[8].mxu1 %v7560_v5  ;;  %4067 = vperm.xlu1 %6823, %v3993_v15   ;;  %v6406_v54 = vpack.c.bf16 %v3541_v56, %v3540_v44  ;;  %v7675_v59 = vld [vmem:[%s7197_s14 + $0xba] sm:$0xff]  ;;  %v4006_v15 = vld [vmem:[%s8167_s3 + $0xb0] sm:$0xff] }
 0x11f   : > { %5956 = vmatmul.mubr.f32.gmra.mrb[26].mxu0 %v7423_v30  ;;  %5587 = vmatprep.mubr.f32.mxu1 %v7564_v3  ;;  %v6262_v30 = vpack.c.bf16 %v1509_v61, %v1508_v9  ;;  %v7679_v9 = vld [vmem:[%s7197_s14 + $0xc2] sm:$0xff]  ;;  %v3549_v44 = vld [vmem:[#allocation6 + $0x468] sm:$0xff] }
 0x120   : > { %5958 = vmatprep.mubr.f32.mxu0 %v7427_v33  ;;  %6257 = vmatpush3.bf16.msra.mxu1 %v6254_v1  ;;  %v7592_v33 = vld [vmem:[%s7197_s14 + $0x6a] sm:$0xff]  ;;  %v4004_v1 = vld [vmem:[%s8167_s3 + $0xa0] sm:$0xff] }
 0x121   : > { %6259 = vmatprep.subr.bf16.mxu1 %v6258_v14  ;;  %4072 = vperm.xlu0 %6822, %v3994_v2   ;;  %v4005_v61 = vld [vmem:[%s8167_s3 + $0xa8] sm:$0xff]  ;;  %v4828_v2 = vld [vmem:[%s7197_s14 + $0x55] sm:$0xff] }
 0x122   : > { %5588 = vmatmul.mubr.f32.gmra.mrb[10].mxu1 %v7576_v16  ;;  %4077 = vperm.xlu1 %6823, %v3995_v25   ;;  %v7691_v25 = vld [vmem:[%s7197_s14 + $0xca] sm:$0xff] }
 0x123   : > { %5959 = vmatmul.mubr.f32.gmra.mrb[28].mxu0 %v7433_v45  ;;  %5590 = vmatprep.mubr.f32.mxu1 %v7580_v11  ;;  %v6266_v45 = vpack.c.bf16 %v1511_v19, %v1510_v4  ;;  %v3544_v4 = vld [vmem:[#allocation6 + $0x440] sm:$0xff]  ;;  %v3545_v19 = vld [vmem:[#allocation6 + $0x448] sm:$0xff] }
 0x124   : > { %5961 = vmatprep.mubr.f32.mxu0 %v7437_v51  ;;  %6261 = vmatpush3.bf16.msra.mxu1 %v6258_v14  ;;  %v7608_v51 = vld [vmem:[%s7197_s14 + $0x7a] sm:$0xff]  ;;  %v4827_v14 = vld [vmem:[%s7197_s14 + $0x4d] sm:$0xff] }
 0x125   : > { %6263 = vmatprep.subr.bf16.mxu1 %v6262_v30  ;;  %4082 = vperm.xlu0 %6822, %v3996_v10   ;;  %v4829_v10 = vld [vmem:[%s7197_s14 + $0x5d] sm:$0xff] }
 0x126   : > { %5591 = vmatmul.mubr.f32.gmra.mrb[12].mxu1 %v7592_v33  ;;  %4087 = vperm.xlu1 %6823, %v3997_v32   ;;  %v4007_v32 = vld [vmem:[%s8167_s3 + $0xb8] sm:$0xff] }
 0x127   : > { %5962 = vmatmul.mubr.f32.gmra.mrb[30].mxu0 %v7443_v60  ;;  %5593 = vmatprep.mubr.f32.mxu1 %v7596_v21  ;;  %v3998_v60 = vld [vmem:[%s8167_s3 + $0x70] sm:$0xff]  ;;  %v4011_v56 = vld [vmem:[%s8167_s3 + $0xd8] sm:$0xff] }
 0x128   : > { %5964 = vmatprep.mubr.f32.mxu0 %v7447_v63  ;;  %6265 = vmatpush3.bf16.msra.mxu1 %v6262_v30  ;;  %v7625_v63 = vld [vmem:[%s7197_s14 + $0x8a] sm:$0xff] }
 0x129   : > { %6267 = vmatprep.subr.bf16.mxu1 %v6266_v45  ;;  %4092 = vperm.xlu0 %6822, %v3998_v60   ;;  %v4008_v60 = vld [vmem:[%s8167_s3 + $0xc0] sm:$0xff] }
 0x12a   : > { %5594 = vmatmul.mubr.f32.gmra.mrb[14].mxu1 %v7608_v51  ;;  %4097 = vperm.xlu1 %6823, %v3999_v26   ;;  %v3546_v26 = vld [vmem:[#allocation6 + $0x450] sm:$0xff] }
 0x12b   : > { %5965 = vmatmul.mubr.f32.gmra.mrb[32].mxu0 %v7455_v6  ;;  %5596 = vmatprep.mubr.f32.mxu1 %v7612_v27  ;;  %v4000_v6 = vld [vmem:[%s8167_s3 + $0x80] sm:$0xff] }
 0x12c   : > { %5967 = vmatprep.mubr.f32.mxu0 %v4820_v20  ;;  %6269 = vmatpush3.bf16.msra.mxu1 %v6266_v45  ;;  %v7695_v45 = vld [vmem:[%s7197_s14 + $0xd2] sm:$0xff]  ;;  %v4830_v20 = vld [vmem:[%s7197_s14 + $0x65] sm:$0xff] }
 0x12d   : > { %6430 = vmatprep.subr.bf16.mxu1 %v7207_v7  ;;  %4102 = vperm.xlu0 %6822, %v4000_v6   ;;  %v3547_v6 = vld [vmem:[#allocation6 + $0x458] sm:$0xff] }
 0x12e   : > { %5597 = vmatmul.mubr.f32.gmra.mrb[16].mxu1 %v7625_v63  ;;  %4107 = vperm.xlu1 %6823, %v4001_v0   ;;  %v7717_v0 = vld [vmem:[%s7197_s14 + $0xe2] sm:$0xff] }
 0x12f   : > { %5968 = vmatmul.mubr.f32.gmra.mrb[34].mxu0 %v4821_v22  ;;  %5599 = vmatprep.mubr.f32.mxu1 %v7629_v36  ;;  %v6414_v22 = vpack.c.bf16 %v3545_v19, %v3544_v4  ;;  %v7749_v4 = vld [vmem:[%s7197_s14 + $0x102] sm:$0xff]  ;;  %v4836_v19 = vld [vmem:[%s7197_s14 + $0x95] sm:$0xff] }
 0x130   : > { %6002 = vmatprep.mubr.f32.mxu0 %v4822_v28  ;;  %v7707_v28 = vld [vmem:[%s7197_s14 + $0xda] sm:$0xff] }
 0x131   : > { %4112 = vperm.xlu0 %6822, %v4002_v24   ;;  %v4832_v24 = vld [vmem:[%s7197_s14 + $0x75] sm:$0xff] }
 0x132   : > { %5600 = vmatmul.mubr.f32.gmra.mrb[18].mxu1 %v7642_v34  ;;  %4117 = vperm.xlu1 %6823, %v4003_v52   ;;  %v4012_v52 = vld [vmem:[%s8167_s3 + $0xe0] sm:$0xff] }
 0x133   : > { %6003 = vmatmul.mubr.f32.vlgmr.msra.gmra.mrb[0].mxu0 %v4823_v35  ;;  %5602 = vmatprep.mubr.f32.mxu1 %v7646_v47  ;;  %v4831_v35 = vld [vmem:[%s7197_s14 + $0x6d] sm:$0xff] }
 0x134   : > { %6401 = vmatpush3.bf16.msra.mxu0 %v7492_v13  ;;  %6005 = vmatprep.mubr.f32.mxu0 %v4824_v38  ;;  %v3542_v13 = vld [vmem:[#allocation6 + $0x430] sm:$0xff]  ;;  %v6418_v38 = vpack.c.bf16 %v3547_v6, %v3546_v26 }
 0x135   : > { %6403 = vmatprep.subr.bf16.mxu0 %v6402_v53  ;;  %4122 = vperm.xlu0 %6822, %v4004_v1   ;;  %v6410_v30 = vpack.c.bf16 %v3543_v8, %v3542_v13  ;;  %v4833_v1 = vld [vmem:[%s7197_s14 + $0x7d] sm:$0xff]  ;;  %v7765_v26 = vld [vmem:[%s7197_s14 + $0x112] sm:$0xff]  ;;  %v4838_v6 = vld [vmem:[%s7197_s14 + $0xa5] sm:$0xff] }
 0x136   : > { %5603 = vmatmul.mubr.f32.gmra.mrb[20].mxu1 %v7658_v55  ;;  %4127 = vperm.xlu1 %6823, %v4005_v61   ;;  %v3550_v8 = vld [vmem:[#allocation6 + $0x470] sm:$0xff]  ;;  %v4013_v61 = vld [vmem:[%s8167_s3 + $0xe8] sm:$0xff] }
 0x137   : > { %6006 = vmatmul.mubr.f32.gmra.mrb[2].mxu0 %v4825_v46  ;;  %5605 = vmatprep.mubr.f32.mxu1 %v7663_v57  ;;  %v7726_v46 = vld [vmem:[%s7197_s14 + $0xea] sm:$0xff] }
 0x138   : > { %6008 = vmatprep.mubr.f32.mxu0 %v4826_v62  ;;  %6405 = vmatpush3.bf16.msra.mxu0 %v6402_v53  ;;  %v3548_v53 = vld [vmem:[#allocation6 + $0x460] sm:$0xff] }
 0x139   : > { %6407 = vmatprep.subr.bf16.mxu0 %v6406_v54  ;;  %4132 = vperm.xlu0 %6822, %v4006_v15   ;;  %v7733_v62 = vld [vmem:[%s7197_s14 + $0xf2] sm:$0xff]  ;;  %v6422_v13 = vpack.c.bf16 %v3549_v44, %v3548_v53  ;;  %v7742_v15 = vld [vmem:[%s7197_s14 + $0xfa] sm:$0xff] }
 0x13a   : > { %5606 = vmatmul.mubr.f32.gmra.mrb[22].mxu1 %v7675_v59  ;;  %4137 = vperm.xlu1 %6823, %v4007_v32   ;;  %v4015_v32 = vld [vmem:[%s8167_s3 + $0xf8] sm:$0xff] }
 0x13b   : > { %6009 = vmatmul.mubr.f32.gmra.mrb[4].mxu0 %v4827_v14  ;;  %5608 = vmatprep.mubr.f32.mxu1 %v7679_v9  ;;  %v3551_v14 = vld [vmem:[#allocation6 + $0x478] sm:$0xff]  ;;  %v4019_v53 = vld [vmem:[%s8167_s3 + $0x118] sm:$0xff] }
 0x13c   : > { %6011 = vmatprep.mubr.f32.mxu0 %v4828_v2  ;;  %6409 = vmatpush3.bf16.msra.mxu0 %v6406_v54  ;;  %v4834_v54 = vld [vmem:[%s7197_s14 + $0x85] sm:$0xff]  ;;  %v4841_v44 = vld [vmem:[%s7197_s14 + $0xbd] sm:$0xff] }
 0x13d   : > { %6411 = vmatprep.subr.bf16.mxu0 %v6410_v30  ;;  %4142 = vperm.xlu0 %6822, %v4008_v60   ;;  %v4014_v2 = vld [vmem:[%s8167_s3 + $0xf0] sm:$0xff] }
 0x13e   : > { %5609 = vmatmul.mubr.f32.gmra.mrb[24].mxu1 %v7691_v25  ;;  %4147 = vperm.xlu1 %6823, %v4009_v29   ;;  %v7758_v60 = vld [vmem:[%s7197_s14 + $0x10a] sm:$0xff] }
 0x13f   : > { %6012 = vmatmul.mubr.f32.gmra.mrb[6].mxu0 %v4829_v10  ;;  %5611 = vmatprep.mubr.f32.mxu1 %v7695_v45  ;;  %v6426_v10 = vpack.c.bf16 %v3551_v14, %v3550_v8  ;;  %v4017_v29 = vld [vmem:[%s8167_s3 + $0x108] sm:$0xff] }
 0x140   : > { %6014 = vmatprep.mubr.f32.mxu0 %v4830_v20  ;;  %6413 = vmatpush3.bf16.msra.mxu0 %v6410_v30  ;;  %v4835_v30 = vld [vmem:[%s7197_s14 + $0x8d] sm:$0xff]  ;;  %v4016_v20 = vld [vmem:[%s8167_s3 + $0x100] sm:$0xff] }
 0x141   : > { %6415 = vmatprep.subr.bf16.mxu0 %v6414_v22  ;;  %4152 = vperm.xlu0 %6822, %v4010_v41   ;;  %v7774_v41 = vld [vmem:[%s7197_s14 + $0x11a] sm:$0xff]  ;;  %v4879_v14 = vld [vmem:[%s7197_s14 + $0xce] sm:$0xff] }
 0x142   : > { %5612 = vmatmul.mubr.f32.gmra.mrb[26].mxu1 %v7707_v28  ;;  %4157 = vperm.xlu1 %6823, %v4011_v56   ;;  %v4842_v56 = vld [vmem:[%s7197_s14 + $0xc5] sm:$0xff]  ;;  %v4735_v8 = vld [vmem:[%s7197_s14 + $0xbb] sm:$0xff] }
 0x143   : > { %6015 = vmatmul.mubr.f32.gmra.mrb[8].mxu0 %v4831_v35  ;;  %5614 = vmatprep.mubr.f32.mxu1 %v7717_v0  ;;  %v4018_v35 = vld [vmem:[%s8167_s3 + $0x110] sm:$0xff] }
 0x144   : > { %6017 = vmatprep.mubr.f32.mxu0 %v4832_v24  ;;  %6417 = vmatpush3.bf16.msra.mxu0 %v6414_v22  ;;  %v4837_v22 = vld [vmem:[%s7197_s14 + $0x9d] sm:$0xff]  ;;  %v4839_v24 = vld [vmem:[%s7197_s14 + $0xad] sm:$0xff] }
 0x145   : > { %6419 = vmatprep.subr.bf16.mxu0 %v6418_v38  ;;  %4162 = vperm.xlu0 %6822, %v4012_v52   ;;  %v4843_v52 = vld [vmem:[%s7197_s14 + $0xcd] sm:$0xff] }
 0x146   : > { %5615 = vmatmul.mubr.f32.gmra.mrb[28].mxu1 %v7726_v46  ;;  %4167 = vperm.xlu1 %6823, %v4013_v61   ;;  %v4736_v61 = vld [vmem:[%s7197_s14 + $0xc3] sm:$0xff] }
 0x147   : > { %6018 = vmatmul.mubr.f32.gmra.mrb[10].mxu0 %v4833_v1  ;;  %5617 = vmatprep.mubr.f32.mxu1 %v7733_v62  ;;  %v4844_v1 = vld [vmem:[%s7197_s14 + $0xd5] sm:$0xff] }
 0x148   : > { %6020 = vmatprep.mubr.f32.mxu0 %v4834_v54  ;;  %6421 = vmatpush3.bf16.msra.mxu0 %v6418_v38  ;;  %v4840_v38 = vld [vmem:[%s7197_s14 + $0xb5] sm:$0xff] }
 0x149   : > { %6423 = vmatprep.subr.bf16.mxu0 %v6422_v13  ;;  %4172 = vperm.xlu0 %6822, %v4014_v2   ;;  %v4734_v54 = vld [vmem:[%s7197_s14 + $0xb3] sm:$0xff]  ;;  %v4737_v2 = vld [vmem:[%s7197_s14 + $0xcb] sm:$0xff] }
 0x14a   : > { %5618 = vmatmul.mubr.f32.gmra.mrb[30].mxu1 %v7742_v15  ;;  %4177 = vperm.xlu1 %6823, %v4015_v32   ;;  %v4883_v32 = vld [vmem:[%s7197_s14 + $0xee] sm:$0xff] }
 0x14b   : > { %6021 = vmatmul.mubr.f32.gmra.mrb[12].mxu0 %v4835_v30  ;;  %5620 = vmatprep.mubr.f32.mxu1 %v7749_v4  ;;  %v4881_v30 = vld [vmem:[%s7197_s14 + $0xde] sm:$0xff] }
 0x14c   : > { %6023 = vmatprep.mubr.f32.mxu0 %v4836_v19  ;;  %6425 = vmatpush3.bf16.msra.mxu0 %v6422_v13  ;;  %v4878_v13 = vld [vmem:[%s7197_s14 + $0xc6] sm:$0xff] }
 0x14d   : > { %6427 = vmatprep.subr.bf16.mxu0 %v6426_v10  ;;  %4182 = vperm.xlu0 %6822, %v4016_v20   ;;  %v4882_v19 = vld [vmem:[%s7197_s14 + $0xe6] sm:$0xff]  ;;  %v4884_v20 = vld [vmem:[%s7197_s14 + $0xf6] sm:$0xff] }
 0x14e   : > { %5621 = vmatmul.mubr.f32.gmra.mrb[32].mxu1 %v7758_v60  ;;  %4187 = vperm.xlu1 %6823, %v4017_v29   ;;  %v4886_v29 = vld [vmem:[%s7197_s14 + $0x106] sm:$0xff] }
 0x14f   : > { %6024 = vmatmul.mubr.f32.gmra.mrb[14].mxu0 %v4837_v22  ;;  %5623 = vmatprep.mubr.f32.mxu1 %v7765_v26  ;;  %v4741_v22 = vld [vmem:[%s7197_s14 + $0xeb] sm:$0xff] }
 0x150   : > { %6026 = vmatprep.mubr.f32.mxu0 %v4838_v6  ;;  %6429 = vmatpush3.bf16.msra.mxu0 %v6426_v10  ;;  %v4739_v10 = vld [vmem:[%s7197_s14 + $0xdb] sm:$0xff]  ;;  %v4742_v6 = vld [vmem:[%s7197_s14 + $0xf3] sm:$0xff] }
 0x151   : > { %4192 = vperm.xlu0 %6822, %v4018_v35   ;;  %v4887_v35 = vld [vmem:[%s7197_s14 + $0x10e] sm:$0xff] }
 0x152   : > { %5624 = vmatmul.mubr.f32.gmra.mrb[34].mxu1 %v7774_v41  ;;  %4197 = vperm.xlu1 %6823, %v4019_v53   ;;  %v4745_v53 = vld [vmem:[%s7197_s14 + $0x10b] sm:$0xff] }
 0x153   : > { %6027 = vmatmul.mubr.f32.gmra.mrb[16].mxu0 %v4839_v24  ;;  %5658 = vmatprep.mubr.f32.mxu1 %v7506_v40  ;;  %v4845_v40 = vld [vmem:[%s7197_s14 + $0xdd] sm:$0xff] }
 0x154   : > { %6029 = vmatprep.mubr.f32.mxu0 %v4840_v38  ;;  %v4744_v24 = vld [vmem:[%s7197_s14 + $0x103] sm:$0xff]  ;;  %v4888_v38 = vld [vmem:[%s7197_s14 + $0x116] sm:$0xff] }
 0x156   : > { %5659 = vmatmul.mubr.f32.vlgmr.msra.gmra.mrb[0].mxu1 %v7511_v39  ;;  %v4847_v39 = vld [vmem:[%s7197_s14 + $0xed] sm:$0xff] }
 0x157   : > { %6030 = vmatmul.mubr.f32.gmra.mrb[18].mxu0 %v4841_v44  ;;  %6438 = vmatpush3.bf16.msra.mxu1 %v7207_v7  ;;  %v4846_v7 = vld [vmem:[%s7197_s14 + $0xe5] sm:$0xff] }
 0x158   : > { %5661 = vmatprep.mubr.f32.mxu1 %v7516_v42  ;;  %6032 = vmatprep.mubr.f32.mxu0 %v4842_v56  ;;  %v4848_v42 = vld [vmem:[%s7197_s14 + $0xf5] sm:$0xff]  ;;  %v4889_v44 = vld [vmem:[%s7197_s14 + $0x11e] sm:$0xff] }
 0x159   : > { %6431 = vmatprep.subr.bf16.mxu1 %v7209_v12  ;;  %v4746_v56 = vld [vmem:[%s7197_s14 + $0x113] sm:$0xff] }
 0x15a   : > { %5662 = vmatmul.mubr.f32.gmra.mrb[2].mxu1 %v7528_v50  ;;  %v4850_v50 = vld [vmem:[%s7197_s14 + $0x105] sm:$0xff] }
 0x15b   : > { %6033 = vmatmul.mubr.f32.gmra.mrb[20].mxu0 %v4843_v52  ;;  %5664 = vmatprep.mubr.f32.mxu1 %v7532_v48  ;;  %v4852_v48 = vld [vmem:[%s7197_s14 + $0x115] sm:$0xff]  ;;  %v4890_v52 = vld [vmem:[%s7197_s14 + $0x126] sm:$0xff] }
 0x15c   : > { %6035 = vmatprep.mubr.f32.mxu0 %v4844_v1  ;;  %6439 = vmatpush3.bf16.msra.mxu1 %v7209_v12  ;;  %v4849_v12 = vld [vmem:[%s7197_s14 + $0xfd] sm:$0xff] }
 0x15d   : > { %6432 = vmatprep.subr.bf16.mxu1 %v7214_v17  ;;  %v4747_v1 = vld [vmem:[%s7197_s14 + $0x11b] sm:$0xff] }
 0x15e   : > { %5665 = vmatmul.mubr.f32.gmra.mrb[4].mxu1 %v7544_v58  ;;  %v4854_v58 = vld [vmem:[%s7197_s14 + $0x125] sm:$0xff] }
 0x15f   : > { %6036 = vmatmul.mubr.f32.gmra.mrb[22].mxu0 %v4845_v40  ;;  %5667 = vmatprep.mubr.f32.mxu1 %v7548_v18  ;;  %v4856_v18 = vld [vmem:[%s7197_s14 + $0x135] sm:$0xff] }
 0x160   : > { %6038 = vmatprep.mubr.f32.mxu0 %v4846_v7  ;;  %6440 = vmatpush3.bf16.msra.mxu1 %v7214_v17  ;;  %v4851_v17 = vld [vmem:[%s7197_s14 + $0x10d] sm:$0xff]  ;;  %v4748_v7 = vld [vmem:[%s7197_s14 + $0x123] sm:$0xff] }
 0x161   : > { %6433 = vmatprep.subr.bf16.mxu1 %v7218_v23  ;;  %v4891_v40 = vld [vmem:[%s7197_s14 + $0x12e] sm:$0xff] }
 0x162   : > { %5668 = vmatmul.mubr.f32.gmra.mrb[6].mxu1 %v7560_v5  ;;  %v4858_v5 = vld [vmem:[%s7197_s14 + $0x26] sm:$0xff] }
 0x163   : > { %6039 = vmatmul.mubr.f32.gmra.mrb[24].mxu0 %v4847_v39  ;;  %5670 = vmatprep.mubr.f32.mxu1 %v7564_v3  ;;  %v4860_v3 = vld [vmem:[%s7197_s14 + $0x36] sm:$0xff] }
 0x164   : > { %6041 = vmatprep.mubr.f32.mxu0 %v4848_v42  ;;  %6441 = vmatpush3.bf16.msra.mxu1 %v7218_v23  ;;  %v4853_v23 = vld [vmem:[%s7197_s14 + $0x11d] sm:$0xff]  ;;  %v4749_v42 = vld [vmem:[%s7197_s14 + $0x12b] sm:$0xff] }
 0x165   : > { %6434 = vmatprep.subr.bf16.mxu1 %v7224_v31  ;;  %v4892_v39 = vld [vmem:[%s7197_s14 + $0x136] sm:$0xff] }
 0x166   : > { %5671 = vmatmul.mubr.f32.gmra.mrb[8].mxu1 %v7576_v16  ;;  %v4862_v16 = vld [vmem:[%s7197_s14 + $0x46] sm:$0xff] }
 0x167   : > { %6042 = vmatmul.mubr.f32.gmra.mrb[26].mxu0 %v4849_v12  ;;  %5673 = vmatprep.mubr.f32.mxu1 %v7580_v11  ;;  %v4863_v11 = vld [vmem:[%s7197_s14 + $0x4e] sm:$0xff]  ;;  %v4893_v12 = vld [vmem:[%s7197_s14 + $0x13e] sm:$0xff] }
 0x168   : > { %6044 = vmatprep.mubr.f32.mxu0 %v4850_v50  ;;  %6442 = vmatpush3.bf16.msra.mxu1 %v7224_v31  ;;  %v4855_v31 = vld [vmem:[%s7197_s14 + $0x12d] sm:$0xff] }
 0x169   : > { %6435 = vmatprep.subr.bf16.mxu1 %v7228_v37 }
 0x16a   : > { %5674 = vmatmul.mubr.f32.gmra.mrb[10].mxu1 %v7592_v33  ;;  %v4864_v33 = vld [vmem:[%s7197_s14 + $0x56] sm:$0xff] }
 0x16b   : > { %6045 = vmatmul.mubr.f32.gmra.mrb[28].mxu0 %v4851_v17  ;;  %5676 = vmatprep.mubr.f32.mxu1 %v7596_v21  ;;  %v4865_v21 = vld [vmem:[%s7197_s14 + $0x5e] sm:$0xff] }
 0x16c   : > { %6047 = vmatprep.mubr.f32.mxu0 %v4852_v48  ;;  %6443 = vmatpush3.bf16.msra.mxu1 %v7228_v37  ;;  %v4857_v37 = vld [vmem:[%s7197_s14 + $0x13d] sm:$0xff] }
 0x16d   : > { %6436 = vmatprep.subr.bf16.mxu1 %v7232_v43 }
 0x16e   : > { %5677 = vmatmul.mubr.f32.gmra.mrb[12].mxu1 %v7608_v51  ;;  %v4866_v51 = vld [vmem:[%s7197_s14 + $0x66] sm:$0xff] }
 0x16f   : > { %6048 = vmatmul.mubr.f32.gmra.mrb[30].mxu0 %v4853_v23  ;;  %5679 = vmatprep.mubr.f32.mxu1 %v7612_v27  ;;  %v4867_v27 = vld [vmem:[%s7197_s14 + $0x6e] sm:$0xff] }
 0x170   : > { %6050 = vmatprep.mubr.f32.mxu0 %v4854_v58  ;;  %6444 = vmatpush3.bf16.msra.mxu1 %v7232_v43  ;;  %v4859_v43 = vld [vmem:[%s7197_s14 + $0x2e] sm:$0xff] }
 0x171   : > { %6437 = vmatprep.subr.bf16.mxu1 %v7236_v49 }
 0x172   : > { %5680 = vmatmul.mubr.f32.gmra.mrb[14].mxu1 %v7625_v63  ;;  %v4868_v63 = vld [vmem:[%s7197_s14 + $0x76] sm:$0xff] }
 0x173   : > { %6051 = vmatmul.mubr.f32.gmra.mrb[32].mxu0 %v4855_v31  ;;  %5682 = vmatprep.mubr.f32.mxu1 %v7629_v36  ;;  %v4869_v36 = vld [vmem:[%s7197_s14 + $0x7e] sm:$0xff] }
 0x174   : > { %6053 = vmatprep.mubr.f32.mxu0 %v4856_v18  ;;  %6445 = vmatpush3.bf16.msra.mxu1 %v7236_v49  ;;  %v4861_v49 = vld [vmem:[%s7197_s14 + $0x3e] sm:$0xff] }
 0x176   : > { %5683 = vmatmul.mubr.f32.gmra.mrb[16].mxu1 %v7642_v34  ;;  %v4870_v34 = vld [vmem:[%s7197_s14 + $0x86] sm:$0xff] }
 0x177   : > { %6054 = vmatmul.mubr.f32.gmra.mrb[34].mxu0 %v4857_v37  ;;  %5685 = vmatprep.mubr.f32.mxu1 %v7646_v47  ;;  %v4871_v47 = vld [vmem:[%s7197_s14 + $0x8e] sm:$0xff] }
 0x178   : > { %6088 = vmatprep.mubr.f32.mxu0 %v4858_v5 }
 0x17a   : > { %5686 = vmatmul.mubr.f32.gmra.mrb[18].mxu1 %v7658_v55  ;;  %v4872_v55 = vld [vmem:[%s7197_s14 + $0x96] sm:$0xff] }
 0x17b   : > { %6089 = vmatmul.mubr.f32.vlgmr.msra.gmra.mrb[0].mxu0 %v4859_v43  ;;  %5688 = vmatprep.mubr.f32.mxu1 %v7663_v57  ;;  %v4873_v57 = vld [vmem:[%s7197_s14 + $0x9e] sm:$0xff] }
 0x17c   : > { %6091 = vmatprep.mubr.f32.mxu0 %v4860_v3 }
 0x17e   : > { %5689 = vmatmul.mubr.f32.gmra.mrb[20].mxu1 %v7675_v59  ;;  %v4712_v59 = vld [vmem:[%s7197_s14 + $0x122] sm:$0xff] }
 0x17f   : > { %6092 = vmatmul.mubr.f32.gmra.mrb[2].mxu0 %v4861_v49  ;;  %5691 = vmatprep.mubr.f32.mxu1 %v7679_v9  ;;  %v4874_v9 = vld [vmem:[%s7197_s14 + $0xa6] sm:$0xff] }
 0x180   : > { %6094 = vmatprep.mubr.f32.mxu0 %v4862_v16 }
 0x182   : > { %5692 = vmatmul.mubr.f32.gmra.mrb[22].mxu1 %v7691_v25  ;;  %v4713_v25 = vld [vmem:[%s7197_s14 + $0x12a] sm:$0xff] }
 0x183   : > { %6095 = vmatmul.mubr.f32.gmra.mrb[4].mxu0 %v4863_v11  ;;  %5694 = vmatprep.mubr.f32.mxu1 %v7695_v45  ;;  %v4875_v45 = vld [vmem:[%s7197_s14 + $0xae] sm:$0xff] }
 0x184   : > { %6097 = vmatprep.mubr.f32.mxu0 %v4864_v33 }
 0x186   : > { %5695 = vmatmul.mubr.f32.gmra.mrb[24].mxu1 %v7707_v28  ;;  %v4732_v28 = vld [vmem:[%s7197_s14 + $0xa3] sm:$0xff] }
 0x187   : > { %6098 = vmatmul.mubr.f32.gmra.mrb[6].mxu0 %v4865_v21  ;;  %5697 = vmatprep.mubr.f32.mxu1 %v7717_v0  ;;  %v4876_v0 = vld [vmem:[%s7197_s14 + $0xb6] sm:$0xff] }
 0x188   : > { %6100 = vmatprep.mubr.f32.mxu0 %v4866_v51 }
 0x189   : > { %v4023_v31 = vpop.permute.xlu0 %4022 }
 0x18a   : > { %5698 = vmatmul.mubr.f32.gmra.mrb[26].mxu1 %v7726_v46  ;;  %v4733_v46 = vld [vmem:[%s7197_s14 + $0xab] sm:$0xff] }
 0x18b   : > { %6101 = vmatmul.mubr.f32.gmra.mrb[8].mxu0 %v4867_v27  ;;  %5700 = vmatprep.mubr.f32.mxu1 %v7733_v62  ;;  %v4877_v62 = vld [vmem:[%s7197_s14 + $0xbe] sm:$0xff] }
 0x18c   : > { %6103 = vmatprep.mubr.f32.mxu0 %v4868_v63  ;;  %v4033_v58 = vpop.permute.xlu1 %4032 }
 0x18e   : > { %5701 = vmatmul.mubr.f32.gmra.mrb[28].mxu1 %v7742_v15  ;;  %v4880_v15 = vld [vmem:[%s7197_s14 + $0xd6] sm:$0xff] }
 0x18f   : > { %6104 = vmatmul.mubr.f32.gmra.mrb[10].mxu0 %v4869_v36  ;;  %5703 = vmatprep.mubr.f32.mxu1 %v7749_v4  ;;  %v4738_v4 = vld [vmem:[%s7197_s14 + $0xd3] sm:$0xff] }
 0x190   : > { %6106 = vmatprep.mubr.f32.mxu0 %v4870_v34  ;;  %v4028_v49 = vpop.permute.xlu0 %4027 }
 0x191   : > { %v4038_v5 = vpop.permute.xlu1 %4037 }
 0x192   : > { %5704 = vmatmul.mubr.f32.gmra.mrb[30].mxu1 %v7758_v60  ;;  %v4740_v60 = vld [vmem:[%s7197_s14 + $0xe3] sm:$0xff] }
 0x193   : > { %6107 = vmatmul.mubr.f32.gmra.mrb[12].mxu0 %v4871_v47  ;;  %5706 = vmatprep.mubr.f32.mxu1 %v7765_v26  ;;  %v4885_v26 = vld [vmem:[%s7197_s14 + $0xfe] sm:$0xff] }
 0x194   : > { %6109 = vmatprep.mubr.f32.mxu0 %v4872_v55  ;;  %v4043_v21 = vpop.permute.xlu0 %4042 }
 0x195   : > { %v4048_v33 = vpop.permute.xlu1 %4047 }
 0x196   : > { %5707 = vmatmul.mubr.f32.gmra.mrb[32].mxu1 %v7774_v41  ;;  %v4743_v41 = vld [vmem:[%s7197_s14 + $0xfb] sm:$0xff]  ;;  %s6737_s14 = smul.u32 288, %s7193_s7 }
 0x197   : > { %6110 = vmatmul.mubr.f32.gmra.mrb[14].mxu0 %v4873_v57  ;;  %5709 = vmatprep.mubr.f32.mxu1 %v4712_v59 }
 0x198   : > { %6112 = vmatprep.mubr.f32.mxu0 %v4874_v9  ;;  %v7925_v47 = vpop.permute.xlu0 %4052  ;;  %s7955_s10 = scalar_lea.vmem [#allocation8], %s6737_s14 }
 0x199   : > { %v7919_v63 = vpop.permute.xlu1 %4057  ;;  %s4414_s27 = sshll.u32 %s7955_s10, 4  ;;  %s8082_s27 = int_to_ptr.vmem [resolvable:$true] %s4414_s27 }
 0x19a   : > { %5710 = vmatmul.mubr.f32.gmra.mrb[34].mxu1 %v4713_v25  ;;  %s6882_s24 = scalar_lea.vmem %s8082_s27, 4608  ;;  %p6889_p12 = scmp.lt.s32.totalorder %s8082_s27, %s6887_s17 }
 0x19b   : > { %6113 = vmatmul.mubr.f32.gmra.mrb[16].mxu0 %v4875_v45  ;;  %5771 = vmatprep.mubr.f32.mxu1 %v4732_v28  ;;  %p6883_p4 = scmp.ne.s32.totalorder %s8082_s27, %s6882_s24  ;;  %p6890_p13 = scmp.lt.s32.totalorder %s6888_s6, %s6882_s24 }
 0x19c   : > { %6115 = vmatprep.mubr.f32.mxu0 %v4876_v0  ;;  %v7933_v9 = vpop.permute.xlu0 %4062 }
 0x19d   : > { %v7931_v59 = vpop.permute.xlu1 %4067  ;;  %p6884_p6 = pnand %p6883_p4, %p7136_p10  ;;  %p6891_p0 = por %p6890_p13, %p6889_p12 }
 0x19e   : > { %5772 = vmatmul.mubr.f32.vlgmr.msra.gmra.mrb[18].mxu1 %v4733_v46  ;;  %v7945_v46 = vld [vmem:[%s8166_s2] ss:$0 sm:$0xff] }
 0x19f   : > { %6116 = vmatmul.mubr.f32.gmra.mrb[18].mxu0 %v4877_v62  ;;  %5774 = vmatprep.mubr.f32.mxu1 %v4734_v54  ;;  %p6885_p8 = pneg %p6884_p6 }
 0x1a0   : > { %6118 = vmatprep.mubr.f32.mxu0 %v4878_v13  ;;  %v7947_v62 = vpop.permute.xlu0 %4072 }
 0x1a1   : > { %v7939_v28 = vpop.permute.xlu1 %4077  ;;  %p6892_p5 = pnand %p6891_p0, %p6885_p8 }
 0x1a2   : > { %5775 = vmatmul.mubr.f32.gmra.mrb[20].mxu1 %v4735_v8 }
 0x1a3   : > { %6119 = vmatmul.mubr.f32.gmra.mrb[20].mxu0 %v4879_v14  ;;  %5777 = vmatprep.mubr.f32.mxu1 %v4736_v61 }
 0x1a4   : > { %6121 = vmatprep.mubr.f32.mxu0 %v4880_v15 }
 0x1a6   : > { %5778 = vmatmul.mubr.f32.gmra.mrb[22].mxu1 %v4737_v2  ;;  %v7951_v2 = vpop.permute.xlu1 %4087 }
 0x1a7   : > { %6122 = vmatmul.mubr.f32.gmra.mrb[22].mxu0 %v4881_v30  ;;  %5780 = vmatprep.mubr.f32.mxu1 %v4738_v4 }
 0x1a8   : > { %6124 = vmatprep.mubr.f32.mxu0 %v4882_v19 }
 0x1aa   : > { %5781 = vmatmul.mubr.f32.gmra.mrb[24].mxu1 %v4739_v10 }
 0x1ab   : > { %6125 = vmatmul.mubr.f32.gmra.mrb[24].mxu0 %v4883_v32  ;;  %5783 = vmatprep.mubr.f32.mxu1 %v4740_v60  ;;  %v7953_v60 = vpop.permute.xlu0 %4082 }
 0x1ac   : > { %6127 = vmatprep.mubr.f32.mxu0 %v4884_v20 }
 0x1ae   : > { %5784 = vmatmul.mubr.f32.gmra.mrb[26].mxu1 %v4741_v22 }
 0x1af   : > { %6128 = vmatmul.mubr.f32.gmra.mrb[26].mxu0 %v4885_v26  ;;  %5786 = vmatprep.mubr.f32.mxu1 %v4742_v6 }
 0x1b0   : > { %6130 = vmatprep.mubr.f32.mxu0 %v4886_v29 }
 0x1b2   : > { %5787 = vmatmul.mubr.f32.gmra.mrb[28].mxu1 %v4743_v41 }
 0x1b3   : > { %6131 = vmatmul.mubr.f32.gmra.mrb[28].mxu0 %v4887_v35  ;;  %5789 = vmatprep.mubr.f32.mxu1 %v4744_v24 }
 0x1b4   : > { %6133 = vmatprep.mubr.f32.mxu0 %v4888_v38 }
 0x1b6   : > { %5790 = vmatmul.mubr.f32.gmra.mrb[30].mxu1 %v4745_v53 }
 0x1b7   : > { %6134 = vmatmul.mubr.f32.gmra.mrb[30].mxu0 %v4889_v44  ;;  %5792 = vmatprep.mubr.f32.mxu1 %v4746_v56 }
 0x1b8   : > { %6136 = vmatprep.mubr.f32.mxu0 %v4890_v52  ;;  %v7961_v52 = vpop.permute.xlu1 %4097 }
 0x1ba   : > { %5793 = vmatmul.mubr.f32.gmra.mrb[32].mxu1 %v4747_v1 }
 0x1bb   : > { %6137 = vmatmul.mubr.f32.gmra.mrb[32].mxu0 %v4891_v40  ;;  %5795 = vmatprep.mubr.f32.mxu1 %v4748_v7 }
 0x1bc   : > { %6139 = vmatprep.mubr.f32.mxu0 %v4892_v39 }
 0x1be   : > { %5796 = vmatmul.mubr.f32.gmra.mrb[34].mxu1 %v4749_v42 }
 0x1bf   : > { %6140 = vmatmul.mubr.f32.gmra.mrb[34].mxu0 %v4893_v12  ;;  %v7967_v12 = vpop.permute.xlu0 %4092 }
 0x229   : > { %v5660_v50 = vpop.f32.mrb[0].mxu1 }
 0x22a   : > { %v1578_v17 = vpop.f32.mrb[1].mxu1 }
 0x22d   : > { %v5663_v48 = vpop.f32.mrb[2].mxu1 }
 0x22e   : > { %v1588_v23 = vpop.f32.mrb[3].mxu1 }
 0x231   : > { %v5666_v18 = vpop.f32.mrb[4].mxu1 }
 0x232   : > { %v1598_v37 = vpop.f32.mrb[5].mxu1 }
 0x235   : > { %v7907_v43 = vpop.f32.mrb[6].mxu1 }
 0x236   : > { %v7909_v3 = vpop.f32.mrb[7].mxu1 }
 0x239   : > { %v7911_v16 = vpop.f32.mrb[8].mxu1 }
 0x23a   : > { %v7913_v11 = vpop.f32.mrb[9].mxu1 }
 0x23d   : > { %v7915_v51 = vpop.f32.mrb[10].mxu1 }
 0x23e   : > { %v7917_v27 = vpop.f32.mrb[11].mxu1 }
 0x241   : > { %v7921_v36 = vpop.f32.mrb[12].mxu1 }
 0x242   : > { %v7923_v34 = vpop.f32.mrb[13].mxu1 }
 0x245   : > { %v7927_v55 = vpop.f32.mrb[14].mxu1 }
 0x246   : > { %v7929_v57 = vpop.f32.mrb[15].mxu1 }
 0x249   : > { %v7935_v25 = vpop.f32.mrb[16].mxu1 }
 0x24a   : > { %v7937_v45 = vpop.f32.mrb[17].mxu1 }
 0x24e   : > { %v6090_v0 = vpop.f32.mrb[0].mxu0 }
 0x24f   : > { %v6446_v54 = vadd.f32 %v6090_v0, %v5660_v50  ;;  %v3618_v13 = vpop.f32.mrb[1].mxu0 }
 0x250   : > { %v6447_v8 = vadd.f32 %v3618_v13, %v1578_v17 }
 0x251   : > { %v3949_v14 = vadd.f32 %v6446_v54, %v7945_v46 }
 0x252   : > { %v3948_v61 = vadd.f32 %v6447_v8, %v7945_v46  ;;  %v6093_v15 = vpop.f32.mrb[2].mxu0  ;;  %v7975_v8 = vpop.permute.xlu1 %4107 }
 0x253   : > { %v4201_v30 = vmul.f32 %v4028_v49, %v3949_v14  ;;  %v6448_v4 = vadd.f32 %v6093_v15, %v5663_v48  ;;  %v3628_v19 = vpop.f32.mrb[3].mxu0 }
 0x254   : > { %v4200_v10 = vmul.f32 %v4023_v31, %v3948_v61  ;;  %v6449_v32 = vadd.f32 %v3628_v19, %v1588_v23  ;;  %v7981_v19 = vpop.permute.xlu0 %4102 }
 0x255   : > { %4237 = vst [vmem:[%s7955_s10 + $0x8] sm:$0xff] %v4201_v30  ;;  %v4314_v20 = vmul.f32 %v4201_v30, %v4201_v30  ;;  %v3951_v22 = vadd.f32 %v6448_v4, %v7945_v46 }
 0x256   : > { %4236 = vst [vmem:[%s7955_s10] sm:$0xff] %v4200_v10  ;;  %v4272_v26 = vadd.f32 %v4201_v30, %v4200_v10  ;;  %v4313_v6 = vmul.f32 %v4200_v10, %v4200_v10  ;;  %v3950_v29 = vadd.f32 %v6449_v32, %v7945_v46  ;;  %v6096_v41 = vpop.f32.mrb[4].mxu0 }
 0x257   : > { %v4203_v35 = vmul.f32 %v4038_v5, %v3951_v22  ;;  %v6450_v24 = vadd.f32 %v6096_v41, %v5666_v18  ;;  %v3638_v38 = vpop.f32.mrb[5].mxu0 }
 0x258   : > { %v4349_v53 = vadd.f32 %v4314_v20, %v4313_v6  ;;  %v4202_v44 = vmul.f32 %v4033_v58, %v3950_v29  ;;  %v6451_v56 = vadd.f32 %v3638_v38, %v1598_v37  ;;  %v7991_v38 = vpop.permute.xlu1 %4117 }
 0x259   : > { %4239 = vst [vmem:[%s7955_s10 + $0x18] sm:$0xff] %v4203_v35  ;;  %v3953_v1 = vadd.f32 %v6450_v24, %v7945_v46  ;;  %v4316_v50 = vmul.f32 %v4203_v35, %v4203_v35 }
 0x25a   : > { %4238 = vst [vmem:[%s7955_s10 + $0x10] sm:$0xff] %v4202_v44  ;;  %v4273_v40 = vadd.f32 %v4272_v26, %v4202_v44  ;;  %v4315_v7 = vmul.f32 %v4202_v44, %v4202_v44  ;;  %v3952_v39 = vadd.f32 %v6451_v56, %v7945_v46  ;;  %v6099_v42 = vpop.f32.mrb[6].mxu0 }
 0x25b   : > { %v4205_v17 = vmul.f32 %v4048_v33, %v3953_v1  ;;  %v6452_v48 = vadd.f32 %v6099_v42, %v7907_v43  ;;  %v3648_v23 = vpop.f32.mrb[7].mxu0 }
 0x25c   : > { %v4350_v58 = vadd.f32 %v4349_v53, %v4315_v7  ;;  %v4204_v31 = vmul.f32 %v4043_v21, %v3952_v39  ;;  %v4274_v18 = vadd.f32 %v4273_v40, %v4203_v35  ;;  %v6453_v37 = vadd.f32 %v3648_v23, %v7909_v3  ;;  %v7997_v40 = vpop.permute.xlu0 %4112 }
 0x25d   : > { %4241 = vst [vmem:[%s7955_s10 + $0x28] sm:$0xff] %v4205_v17  ;;  %v3955_v5 = vadd.f32 %v6452_v48, %v7945_v46  ;;  %v4318_v43 = vmul.f32 %v4205_v17, %v4205_v17 }
 0x25e   : > { %4240 = vst [vmem:[%s7955_s10 + $0x20] sm:$0xff] %v4204_v31  ;;  %v4275_v49 = vadd.f32 %v4274_v18, %v4204_v31  ;;  %v4317_v0 = vmul.f32 %v4204_v31, %v4204_v31  ;;  %v4351_v54 = vadd.f32 %v4350_v58, %v4316_v50  ;;  %v3954_v13 = vadd.f32 %v6453_v37, %v7945_v46  ;;  %v6102_v33 = vpop.f32.mrb[8].mxu0 }
 0x25f   : > { %v4207_v21 = vmul.f32 %v7919_v63, %v3955_v5  ;;  %v6454_v14 = vadd.f32 %v6102_v33, %v7911_v16  ;;  %v3658_v3 = vpop.f32.mrb[9].mxu0 }
 0x260   : > { %v4352_v61 = vadd.f32 %v4351_v54, %v4317_v0  ;;  %v4206_v15 = vmul.f32 %v7925_v47, %v3954_v13  ;;  %v4276_v30 = vadd.f32 %v4275_v49, %v4205_v17  ;;  %v6455_v4 = vadd.f32 %v3658_v3, %v7913_v11 }
 0x261   : > { %4243 = vst [vmem:[%s7955_s10 + $0x38] sm:$0xff] %v4207_v21  ;;  %v3957_v10 = vadd.f32 %v6454_v14, %v7945_v46  ;;  %v4320_v26 = vmul.f32 %v4207_v21, %v4207_v21 }
 0x262   : > { %4242 = vst [vmem:[%s7955_s10 + $0x30] sm:$0xff] %v4206_v15  ;;  %v4277_v32 = vadd.f32 %v4276_v30, %v4206_v15  ;;  %v4319_v20 = vmul.f32 %v4206_v15, %v4206_v15  ;;  %v4353_v63 = vadd.f32 %v4352_v61, %v4318_v43  ;;  %v3956_v16 = vadd.f32 %v6455_v4, %v7945_v46  ;;  %v6105_v22 = vpop.f32.mrb[10].mxu0  ;;  %v8013_v43 = vpop.permute.xlu0 %4122 }
 0x263   : > { %v4209_v47 = vmul.f32 %v7931_v59, %v3957_v10  ;;  %v6456_v6 = vadd.f32 %v6105_v22, %v7915_v51  ;;  %v3668_v11 = vpop.f32.mrb[11].mxu0 }
 0x264   : > { %v4354_v29 = vadd.f32 %v4353_v63, %v4319_v20  ;;  %v4208_v41 = vmul.f32 %v7933_v9, %v3956_v16  ;;  %v4278_v35 = vadd.f32 %v4277_v32, %v4207_v21  ;;  %v6457_v24 = vadd.f32 %v3668_v11, %v7917_v27 }
 0x265   : > { %4245 = vst [vmem:[%s7955_s10 + $0x48] sm:$0xff] %v4209_v47  ;;  %v3959_v53 = vadd.f32 %v6456_v6, %v7945_v46  ;;  %v4322_v9 = vmul.f32 %v4209_v47, %v4209_v47 }
 0x266   : > { %4244 = vst [vmem:[%s7955_s10 + $0x40] sm:$0xff] %v4208_v41  ;;  %v4279_v44 = vadd.f32 %v4278_v35, %v4208_v41  ;;  %v4321_v56 = vmul.f32 %v4208_v41, %v4208_v41  ;;  %v4355_v59 = vadd.f32 %v4354_v29, %v4320_v26  ;;  %v3958_v51 = vadd.f32 %v6457_v24, %v7945_v46  ;;  %v6108_v1 = vpop.f32.mrb[12].mxu0 }
 0x267   : > { %v4211_v7 = vmul.f32 %v7939_v28, %v3959_v53  ;;  %v6458_v27 = vadd.f32 %v6108_v1, %v7921_v36  ;;  %v3678_v39 = vpop.f32.mrb[13].mxu0  ;;  %v8007_v36 = vpop.permute.xlu1 %4127 }
 0x268   : > { %v4356_v42 = vadd.f32 %v4355_v59, %v4321_v56  ;;  %v4210_v50 = vmul.f32 %v7947_v62, %v3958_v51  ;;  %v4280_v17 = vadd.f32 %v4279_v44, %v4209_v47  ;;  %v6459_v48 = vadd.f32 %v3678_v39, %v7923_v34 }
 0x269   : > { %4247 = vst [vmem:[%s7955_s10 + $0x58] sm:$0xff] %v4211_v7  ;;  %v3961_v23 = vadd.f32 %v6458_v27, %v7945_v46  ;;  %v4324_v5 = vmul.f32 %v4211_v7, %v4211_v7 }
 0x26a   : > { %4246 = vst [vmem:[%s7955_s10 + $0x50] sm:$0xff] %v4210_v50  ;;  %v4281_v58 = vadd.f32 %v4280_v17, %v4210_v50  ;;  %v4323_v31 = vmul.f32 %v4210_v50, %v4210_v50  ;;  %v4357_v18 = vadd.f32 %v4356_v42, %v4322_v9  ;;  %v3960_v28 = vadd.f32 %v6459_v48, %v7945_v46  ;;  %v6111_v37 = vpop.f32.mrb[14].mxu0 }
 0x26b   : > { %v4213_v62 = vmul.f32 %v7951_v2, %v3961_v23  ;;  %v6460_v49 = vadd.f32 %v6111_v37, %v7927_v55  ;;  %v3688_v34 = vpop.f32.mrb[15].mxu0  ;;  %v8023_v63 = vpop.permute.xlu1 %4137 }
 0x26c   : > { %v4358_v0 = vadd.f32 %v4357_v18, %v4323_v31  ;;  %v4212_v54 = vmul.f32 %v7953_v60, %v3960_v28  ;;  %v4282_v13 = vadd.f32 %v4281_v58, %v4211_v7  ;;  %v6461_v33 = vadd.f32 %v3688_v34, %v7929_v57 }
 0x26d   : > { %4249 = vst [vmem:[%s7955_s10 + $0x68] sm:$0xff] %v4213_v62  ;;  %v3963_v21 = vadd.f32 %v6460_v49, %v7945_v46  ;;  %v4326_v15 = vmul.f32 %v4213_v62, %v4213_v62 }
 0x26e   : > { %4248 = vst [vmem:[%s7955_s10 + $0x60] sm:$0xff] %v4212_v54  ;;  %v4283_v14 = vadd.f32 %v4282_v13, %v4212_v54  ;;  %v4325_v3 = vmul.f32 %v4212_v54, %v4212_v54  ;;  %v4359_v2 = vadd.f32 %v4358_v0, %v4324_v5  ;;  %v3962_v55 = vadd.f32 %v6461_v33, %v7945_v46  ;;  %v6114_v61 = vpop.f32.mrb[16].mxu0 }
 0x26f   : > { %v4215_v60 = vmul.f32 %v7961_v52, %v3963_v21  ;;  %v6462_v30 = vadd.f32 %v6114_v61, %v7935_v25  ;;  %v3698_v57 = vpop.f32.mrb[17].mxu0  ;;  %v4148_v42 = vpop.permute.xlu1 %4147 }
 0x270   : > { %v4360_v4 = vadd.f32 %v4359_v2, %v4325_v3  ;;  %v4214_v10 = vmul.f32 %v7967_v12, %v3962_v55  ;;  %v4284_v32 = vadd.f32 %v4283_v14, %v4213_v62  ;;  %v6463_v20 = vadd.f32 %v3698_v57, %v7937_v45  ;;  %v8029_v12 = vpop.permute.xlu0 %4132 }
 0x271   : > { %4251 = vst [vmem:[%s7955_s10 + $0x78] sm:$0xff] %v4215_v60  ;;  %v3965_v16 = vadd.f32 %v6462_v30, %v7945_v46  ;;  %v5773_v22 = vpop.f32.mrb[18].mxu1  ;;  %v4328_v29 = vmul.f32 %v4215_v60, %v4215_v60 }
 0x272   : > { %4250 = vst [vmem:[%s7955_s10 + $0x70] sm:$0xff] %v4214_v10  ;;  %v4285_v26 = vadd.f32 %v4284_v32, %v4214_v10  ;;  %v4327_v47 = vmul.f32 %v4214_v10, %v4214_v10  ;;  %v4361_v52 = vadd.f32 %v4360_v4, %v4326_v15  ;;  %v3964_v25 = vadd.f32 %v6463_v20, %v7945_v46  ;;  %v6117_v6 = vpop.f32.mrb[18].mxu0  ;;  %v2076_v11 = vpop.f32.mrb[19].mxu1 }
 0x273   : > { %v4217_v45 = vmul.f32 %v7975_v8, %v3965_v16  ;;  %v6464_v41 = vadd.f32 %v6117_v6, %v5773_v22  ;;  %v3708_v35 = vpop.f32.mrb[19].mxu0  ;;  %v4158_v61 = vpop.permute.xlu1 %4157 }
 0x274   : > { %v4362_v24 = vadd.f32 %v4361_v52, %v4327_v47  ;;  %v4216_v53 = vmul.f32 %v7981_v19, %v3964_v25  ;;  %v4286_v44 = vadd.f32 %v4285_v26, %v4215_v60  ;;  %v6465_v56 = vadd.f32 %v3708_v35, %v2076_v11  ;;  %v4143_v28 = vpop.permute.xlu0 %4142 }
 0x275   : > { %4253 = vst [vmem:[%s7955_s10 + $0x88] sm:$0xff] %v4217_v45  ;;  %v3967_v59 = vadd.f32 %v6464_v41, %v7945_v46  ;;  %v5776_v51 = vpop.f32.mrb[20].mxu1  ;;  %v4330_v50 = vmul.f32 %v4217_v45, %v4217_v45 }
 0x276   : > { %4252 = vst [vmem:[%s7955_s10 + $0x80] sm:$0xff] %v4216_v53  ;;  %v4287_v1 = vadd.f32 %v4286_v44, %v4216_v53  ;;  %v4329_v9 = vmul.f32 %v4216_v53, %v4216_v53  ;;  %v4363_v7 = vadd.f32 %v4362_v24, %v4328_v29  ;;  %v3966_v27 = vadd.f32 %v6465_v56, %v7945_v46  ;;  %v6120_v8 = vpop.f32.mrb[20].mxu0  ;;  %v2086_v39 = vpop.f32.mrb[21].mxu1 }
 0x277   : > { %v4219_v19 = vmul.f32 %v7991_v38, %v3967_v59  ;;  %v6466_v17 = vadd.f32 %v6120_v8, %v5776_v51  ;;  %v3718_v48 = vpop.f32.mrb[21].mxu0  ;;  %v4168_v44 = vpop.permute.xlu1 %4167 }
 0x278   : > { %v4364_v23 = vadd.f32 %v4363_v7, %v4329_v9  ;;  %v4218_v58 = vmul.f32 %v7997_v40, %v3966_v27  ;;  %v4288_v31 = vadd.f32 %v4287_v1, %v4217_v45  ;;  %v6467_v18 = vadd.f32 %v3718_v48, %v2086_v39  ;;  %v4153_v20 = vpop.permute.xlu0 %4152 }
 0x279   : > { %4255 = vst [vmem:[%s7955_s10 + $0x98] sm:$0xff] %v4219_v19  ;;  %v3969_v37 = vadd.f32 %v6466_v17, %v7945_v46  ;;  %v5779_v5 = vpop.f32.mrb[22].mxu1  ;;  %v4332_v13 = vmul.f32 %v4219_v19, %v4219_v19 }
 0x27a   : > { %4254 = vst [vmem:[%s7955_s10 + $0x90] sm:$0xff] %v4218_v58  ;;  %v4289_v62 = vadd.f32 %v4288_v31, %v4218_v58  ;;  %v4331_v49 = vmul.f32 %v4218_v58, %v4218_v58  ;;  %v4365_v34 = vadd.f32 %v4364_v23, %v4330_v50  ;;  %v3968_v38 = vadd.f32 %v6467_v18, %v7945_v46  ;;  %v6123_v0 = vpop.f32.mrb[22].mxu0  ;;  %v2096_v54 = vpop.f32.mrb[23].mxu1 }
 0x27b   : > { %v4221_v40 = vmul.f32 %v8007_v36, %v3969_v37  ;;  %v6468_v33 = vadd.f32 %v6123_v0, %v5779_v5  ;;  %v3728_v21 = vpop.f32.mrb[23].mxu0 }
 0x27c   : > { %v4366_v14 = vadd.f32 %v4365_v34, %v4331_v49  ;;  %v4220_v3 = vmul.f32 %v8013_v43, %v3968_v38  ;;  %v4290_v2 = vadd.f32 %v4289_v62, %v4219_v19  ;;  %v6469_v55 = vadd.f32 %v3728_v21, %v2096_v54  ;;  %v4163_v8 = vpop.permute.xlu0 %4162  ;;  %v4178_v38 = vpop.permute.xlu1 %4177 }
 0x27d   : > { %4257 = vst [vmem:[%s7955_s10 + $0xa8] sm:$0xff] %v4221_v40  ;;  %v3971_v15 = vadd.f32 %v6468_v33, %v7945_v46  ;;  %v5782_v60 = vpop.f32.mrb[24].mxu1  ;;  %v4334_v16 = vmul.f32 %v4221_v40, %v4221_v40 }
 0x27e   : > { %4256 = vst [vmem:[%s7955_s10 + $0xa0] sm:$0xff] %v4220_v3  ;;  %v4291_v30 = vadd.f32 %v4290_v2, %v4220_v3  ;;  %v4333_v57 = vmul.f32 %v4220_v3, %v4220_v3  ;;  %v4367_v4 = vadd.f32 %v4366_v14, %v4332_v13  ;;  %v3970_v36 = vadd.f32 %v6469_v55, %v7945_v46  ;;  %v6126_v10 = vpop.f32.mrb[24].mxu0  ;;  %v2106_v32 = vpop.f32.mrb[25].mxu1 }
 0x27f   : > { %v4223_v43 = vmul.f32 %v8023_v63, %v3971_v15  ;;  %v6470_v22 = vadd.f32 %v6126_v10, %v5782_v60  ;;  %v3738_v26 = vpop.f32.mrb[25].mxu0 }
 0x280   : > { %v4368_v47 = vadd.f32 %v4367_v4, %v4333_v57  ;;  %v4222_v52 = vmul.f32 %v8029_v12, %v3970_v36  ;;  %v4292_v25 = vadd.f32 %v4291_v30, %v4221_v40  ;;  %v6471_v6 = vadd.f32 %v3738_v26, %v2106_v32  ;;  %v4173_v2 = vpop.permute.xlu0 %4172 }
 0x281   : > { %4259 = vst [vmem:[%s7955_s10 + $0xb8] sm:$0xff] %v4223_v43  ;;  %v3973_v11 = vadd.f32 %v6470_v22, %v7945_v46  ;;  %v5785_v29 = vpop.f32.mrb[26].mxu1  ;;  %v4336_v56 = vmul.f32 %v4223_v43, %v4223_v43 }
 0x282   : > { %4258 = vst [vmem:[%s7955_s10 + $0xb0] sm:$0xff] %v4222_v52  ;;  %v4293_v45 = vadd.f32 %v4292_v25, %v4222_v52  ;;  %v4335_v41 = vmul.f32 %v4222_v52, %v4222_v52  ;;  %v4369_v35 = vadd.f32 %v4368_v47, %v4334_v16  ;;  %v3972_v24 = vadd.f32 %v6471_v6, %v7945_v46  ;;  %v6129_v63 = vpop.f32.mrb[26].mxu0  ;;  %v2116_v53 = vpop.f32.mrb[27].mxu1 }
 0x283   : > { %v4225_v59 = vmul.f32 %v4148_v42, %v3973_v11  ;;  %v6472_v12 = vadd.f32 %v6129_v63, %v5785_v29  ;;  %v3748_v51 = vpop.f32.mrb[27].mxu0  ;;  %v4188_v29 = vpop.permute.xlu1 %4187 }
 0x284   : > { %v4370_v1 = vadd.f32 %v4369_v35, %v4335_v41  ;;  %v4224_v9 = vmul.f32 %v4143_v28, %v3972_v24  ;;  %v4294_v7 = vadd.f32 %v4293_v45, %v4223_v43  ;;  %v6473_v27 = vadd.f32 %v3748_v51, %v2116_v53  ;;  %v4183_v63 = vpop.permute.xlu0 %4182 }
 0x285   : > { %4261 = vst [vmem:[%s7955_s10 + $0xc8] sm:$0xff] %v4225_v59  ;;  %v3975_v39 = vadd.f32 %v6472_v12, %v7945_v46  ;;  %v5788_v50 = vpop.f32.mrb[28].mxu1  ;;  %v4338_v31 = vmul.f32 %v4225_v59, %v4225_v59 }
 0x286   : > { %4260 = vst [vmem:[%s7955_s10 + $0xc0] sm:$0xff] %v4224_v9  ;;  %v4295_v19 = vadd.f32 %v4294_v7, %v4224_v9  ;;  %v4337_v17 = vmul.f32 %v4224_v9, %v4224_v9  ;;  %v4371_v48 = vadd.f32 %v4370_v1, %v4336_v56  ;;  %v3974_v23 = vadd.f32 %v6473_v27, %v7945_v46  ;;  %v6132_v42 = vpop.f32.mrb[28].mxu0  ;;  %v2126_v58 = vpop.f32.mrb[29].mxu1 }
 0x287   : > { %v4227_v18 = vmul.f32 %v4158_v61, %v3975_v39  ;;  %v6474_v28 = vadd.f32 %v6132_v42, %v5788_v50  ;;  %v3758_v37 = vpop.f32.mrb[29].mxu0  ;;  %v4198_v42 = vpop.permute.xlu1 %4197 }
 0x288   : > { %v4372_v5 = vadd.f32 %v4371_v48, %v4337_v17  ;;  %v4226_v62 = vmul.f32 %v4153_v20, %v3974_v23  ;;  %v4296_v49 = vadd.f32 %v4295_v19, %v4225_v59  ;;  %v6475_v34 = vadd.f32 %v3758_v37, %v2126_v58  ;;  %v4193_v37 = vpop.permute.xlu0 %4192 }
 0x289   : > { %4263 = vst [vmem:[%s7955_s10 + $0xd8] sm:$0xff] %v4227_v18  ;;  %v3977_v0 = vadd.f32 %v6474_v28, %v7945_v46  ;;  %v5791_v54 = vpop.f32.mrb[30].mxu1  ;;  %v4340_v55 = vmul.f32 %v4227_v18, %v4227_v18 }
 0x28a   : > { %4262 = vst [vmem:[%s7955_s10 + $0xd0] sm:$0xff] %v4226_v62  ;;  %v4297_v13 = vadd.f32 %v4296_v49, %v4226_v62  ;;  %v4339_v40 = vmul.f32 %v4226_v62, %v4226_v62  ;;  %v4373_v33 = vadd.f32 %v4372_v5, %v4338_v31  ;;  %v3976_v21 = vadd.f32 %v6475_v34, %v7945_v46  ;;  %v6135_v14 = vpop.f32.mrb[30].mxu0  ;;  %v2136_v3 = vpop.f32.mrb[31].mxu1 }
 0x28b   : > { %v4229_v61 = vmul.f32 %v4168_v44, %v3977_v0  ;;  %v6476_v15 = vadd.f32 %v6135_v14, %v5791_v54  ;;  %v3768_v60 = vpop.f32.mrb[31].mxu0 }
 0x28c   : > { %v4374_v30 = vadd.f32 %v4373_v33, %v4339_v40  ;;  %v4228_v57 = vmul.f32 %v4163_v8, %v3976_v21  ;;  %v4298_v4 = vadd.f32 %v4297_v13, %v4227_v18  ;;  %v6477_v36 = vadd.f32 %v3768_v60, %v2136_v3 }
 0x28d   : > { %4265 = vst [vmem:[%s7955_s10 + $0xe8] sm:$0xff] %v4229_v61  ;;  %v3979_v10 = vadd.f32 %v6476_v15, %v7945_v46  ;;  %v5794_v32 = vpop.f32.mrb[32].mxu1  ;;  %v4342_v52 = vmul.f32 %v4229_v61, %v4229_v61 }
 0x28e   : > { %4264 = vst [vmem:[%s7955_s10 + $0xe0] sm:$0xff] %v4228_v57  ;;  %v4299_v20 = vadd.f32 %v4298_v4, %v4228_v57  ;;  %v4341_v16 = vmul.f32 %v4228_v57, %v4228_v57  ;;  %v4375_v43 = vadd.f32 %v4374_v30, %v4340_v55  ;;  %v3978_v22 = vadd.f32 %v6477_v36, %v7945_v46  ;;  %v6138_v26 = vpop.f32.mrb[32].mxu0  ;;  %v2146_v47 = vpop.f32.mrb[33].mxu1 }
 0x28f   : > { %v4231_v25 = vmul.f32 %v4178_v38, %v3979_v10  ;;  %v6478_v6 = vadd.f32 %v6138_v26, %v5794_v32  ;;  %v3778_v11 = vpop.f32.mrb[33].mxu0 }
 0x290   : > { %v4376_v45 = vadd.f32 %v4375_v43, %v4341_v16  ;;  %v4230_v41 = vmul.f32 %v4173_v2, %v3978_v22  ;;  %v4300_v35 = vadd.f32 %v4299_v20, %v4229_v61  ;;  %v6479_v24 = vadd.f32 %v3778_v11, %v2146_v47 }
 0x291   : > { %4267 = vst [vmem:[%s7955_s10 + $0xf8] sm:$0xff] %v4231_v25  ;;  %v3981_v53 = vadd.f32 %v6478_v6, %v7945_v46  ;;  %v5797_v44 = vpop.f32.mrb[34].mxu1  ;;  %v4344_v7 = vmul.f32 %v4231_v25, %v4231_v25 }
 0x292   : > { %4266 = vst [vmem:[%s7955_s10 + $0xf0] sm:$0xff] %v4230_v41  ;;  %v4301_v56 = vadd.f32 %v4300_v35, %v4230_v41  ;;  %v4343_v59 = vmul.f32 %v4230_v41, %v4230_v41  ;;  %v4377_v12 = vadd.f32 %v4376_v45, %v4342_v52  ;;  %v3980_v51 = vadd.f32 %v6479_v24, %v7945_v46  ;;  %v6141_v1 = vpop.f32.mrb[34].mxu0  ;;  %v2156_v9 = vpop.f32.mrb[35].mxu1 }
 0x293   : > { %v4233_v27 = vmul.f32 %v4188_v29, %v3981_v53  ;;  %v6480_v8 = vadd.f32 %v6141_v1, %v5797_v44  ;;  %v3788_v39 = vpop.f32.mrb[35].mxu0 }
 0x294   : > { %v4378_v50 = vadd.f32 %v4377_v12, %v4343_v59  ;;  %v4232_v19 = vmul.f32 %v4183_v63, %v3980_v51  ;;  %v4302_v17 = vadd.f32 %v4301_v56, %v4231_v25  ;;  %v6481_v48 = vadd.f32 %v3788_v39, %v2156_v9 }
 0x295   : > { %4269 = vst [vmem:[%s7955_s10 + $0x108] sm:$0xff] %v4233_v27  ;;  %v3983_v23 = vadd.f32 %v6480_v8, %v7945_v46  ;;  %v4346_v62 = vmul.f32 %v4233_v27, %v4233_v27 }
 0x296   : > { %4268 = vst [vmem:[%s7955_s10 + $0x100] sm:$0xff] %v4232_v19  ;;  %v4303_v58 = vadd.f32 %v4302_v17, %v4232_v19  ;;  %v4345_v31 = vmul.f32 %v4232_v19, %v4232_v19  ;;  %v4379_v18 = vadd.f32 %v4378_v50, %v4344_v7  ;;  %v3982_v28 = vadd.f32 %v6481_v48, %v7945_v46 }
 0x297   : > { %v4235_v5 = vmul.f32 %v4198_v42, %v3983_v23 }
 0x298   : > { %v4380_v49 = vadd.f32 %v4379_v18, %v4345_v31  ;;  %v4234_v34 = vmul.f32 %v4193_v37, %v3982_v28  ;;  %v4304_v38 = vadd.f32 %v4303_v58, %v4233_v27 }
 0x299   : > { %4271 = vst [vmem:[%s7955_s10 + $0x118] sm:$0xff] %v4235_v5 }
 0x29a   : > { %4270 = vst [vmem:[%s7955_s10 + $0x110] sm:$0xff] %v4234_v34  ;;  %v4305_v46 = vadd.f32 %v4304_v38, %v4234_v34  ;;  %v4347_v0 = vmul.f32 %v4234_v34, %v4234_v34  ;;  %v4381_v54 = vadd.f32 %v4380_v49, %v4346_v62 }
 0x29b   : > { %6895 = shalt.err (!%p6892_p5)
}
 0x29c   : > { %s6896_s14 = scalar_lea.hbm %s8080_s28, 4608  ;;  %s6900_s10 = scalar_lea.hbm %s8168_s4, 9216 }
 0x29d   : > { %p6897_p9 = scmp.ne.s32.totalorder %s8080_s28, %s6896_s14  ;;  %p6901_p3 = scmp.lt.u32.totalorder %s8080_s28, %s8168_s4 }
 0x29e   : > { %p6902_p7 = scmp.lt.u32.totalorder %s6900_s10, %s6896_s14  ;;  %p6904_p4 = scmp.lt.u32.totalorder %s6896_s14, %s8080_s28 }
 0x29f   : > { %p6898_p1 = pnand %p6897_p9, %p7136_p10 }
 0x2a0   : > { %p6903_p11 = por %p6902_p7, %p6901_p3 }
 0x2a1   : > { %p6899_p2 = pneg %p6898_p1 }
 0x2a2   : > { %p6905_p6 = por %p6904_p4, %p6903_p11 }
 0x2a4   : > { %p6906_p8 = pnand %p6905_p6, %p6899_p2 }
 0x2a6   : > { %6909 = shalt.err (!%p6906_p8)
}
 0x2a7   : > { %s7008_s26 = smov 128   ;;  %s7009_s24 = smov 8   ;;  %v4348_v13 = vmul.f32 %v4235_v5, %v4235_v5  ;;  %v4306_v40 = vadd.f32 %v4305_v46, %v4235_v5  ;;  %v4382_v33 = vadd.f32 %v4381_v54, %v4347_v0  ;;  %vm4390_vm0 = vcmask 1040384  }
 0x2a8   : > { %6745 = dma.vmem_to_hbm [thread:$0]  (%p7136_p10), %s8082_s27, 4608, %s8080_s28, %s4394_s30, %s7008_s26, %s7008_s26, %s7009_s24  }
 0x2a9   : > { %v4307_v21 = vrot.slane %v4306_v40, 4  ;;  %v4383_v14 = vadd.f32 %v4382_v33, %v4348_v13  ;;  %s4605_s25 = sshll.u32 %s7193_s7, 1  ;;  %s4897_s17 = sshll.u32 %s6992_s21, 5 }
 0x2aa   : > { %s299_s27 = scalar_lea.vmem [#allocation9], %s4605_s25  ;;  %s8115_s14 = scalar_lea.hbm %s8169_s5, %s4897_s17 }
 0x2ab   : > { %v4308_v3 = vadd.f32 %v4307_v21, %v4306_v40  ;;  %v4384_v2 = vrot.slane %v4383_v14, 4  ;;  %s4431_s28 = sshll.u32 %s299_s27, 4  ;;  %s4399_s11 = scalar_lea.sflag [#allocation10], %s7193_s7  ;;  %s8117_s28 = int_to_ptr.vmem [resolvable:$true] %s4431_s28 }
 0x2ac   : > { %s6910_s16 = scalar_lea.vmem %s8117_s28, 32  ;;  %s7010_s21 = smov [#allocation9]  }
 0x2ad   : > { %v4309_v55 = vrot.slane %v4308_v3, 2  ;;  %v4385_v61 = vadd.f32 %v4384_v2, %v4383_v14  ;;  %p6911_p12 = scmp.ne.s32.totalorder %s8117_s28, %s6910_s16  ;;  %s6914_s10 = sshll.u32 %s7010_s21, 4  ;;  %s6915_s10 = int_to_ptr.vmem [resolvable:$false] %s6914_s10 }
 0x2ae   : > { %s6916_s8 = scalar_lea.vmem %s6915_s10, 64  ;;  %p6917_p5 = scmp.lt.s32.totalorder %s8117_s28, %s6915_s10 }
 0x2af   : > { %v4310_v15 = vadd.f32 %v4309_v55, %v4308_v3  ;;  %v4386_v60 = vrot.slane %v4385_v61, 2  ;;  %p6912_p13 = pnand %p6911_p12, %p7136_p10  ;;  %p6918_p9 = scmp.lt.s32.totalorder %s6916_s8, %s6910_s16 }
 0x2b1   : > { %v4311_v30 = vrot.slane %v4310_v15, 1  ;;  %v4387_v57 = vadd.f32 %v4386_v60, %v4385_v61  ;;  %p6913_p0 = pneg %p6912_p13  ;;  %p6919_p1 = por %p6918_p9, %p6917_p5 }
 0x2b3   : > { %v4388_v4 = vrot.slane %v4387_v57, 1  ;;  %v4312_v36 = vadd.f32 %v4311_v30, %v4310_v15  ;;  %p6920_p2 = pnand %p6919_p1, %p6913_p0 }
 0x2b5   : > { %v4389_v10 = vadd.f32 %v4388_v4, %v4387_v57 }
 0x2b7   : > { %v4391_v32 = vsel %vm4390_vm0, %v4312_v36, %v4389_v10 }
 0x2b8   : > { %4392 = vst [vmem:[%s299_s27] sm:$0x3] %v4391_v32 }
 0x2b9   : > { %6923 = shalt.err (!%p6920_p2)
}
 0x2ba   : > { %s6924_s7 = scalar_lea.hbm %s8115_s14, 32  ;;  %s6928_s24 = scalar_lea.hbm %s8169_s5, 64 }
 0x2bb   : > { %p6925_p3 = scmp.ne.s32.totalorder %s8115_s14, %s6924_s7  ;;  %p6929_p4 = scmp.lt.u32.totalorder %s8115_s14, %s8169_s5 }
 0x2bc   : > { %p6930_p6 = scmp.lt.u32.totalorder %s6928_s24, %s6924_s7  ;;  %p6932_p12 = scmp.lt.u32.totalorder %s6924_s7, %s8115_s14 }
 0x2bd   : > { %p6926_p7 = pnand %p6925_p3, %p7136_p10 }
 0x2be   : > { %p6931_p8 = por %p6930_p6, %p6929_p4 }
 0x2bf   : > { %p6927_p11 = pneg %p6926_p7 }
 0x2c0   : > { %p6933_p13 = por %p6932_p12, %p6931_p8 }
 0x2c2   : > { %p6934_p0 = pnand %p6933_p13, %p6927_p11 }
 0x2c4   : > { %6937 = shalt.err (!%p6934_p0)
}
 0x2c5   : > { %6746 = dma.vmem_to_hbm [thread:$0]  (%p7136_p10), %s8117_s28, 32, %s8115_s14, %s4399_s11  }
 0x2c6 PF: > { %s4443_s27 = sand.u32 1, %s6980_s18   ;;  %p8188_p5 = scmp.ne.s32.totalorder %s8178_s29, 0 }
 0x2c7   : > { %p8189_p9 = scmp.ge.s32.totalorder %s7000_s23, 2  ;;  %s4444_s30 = scalar_lea.sflag [#allocation5], %s4443_s27 }
 0x2c9   : > { %p6758_p1 = pnand %p8189_p9, %p8188_p5 }
 0x2cb   : > { %6971 = dma.done.wait (!%p6758_p1), %s4444_s30, 4608  }
 0x2cc   : > { %6973 = vsyncadd (!%p6758_p1), %s4444_s30, 4294962688  ;;  %s4453_s6 = scalar_lea.sflag [#allocation10], %s4443_s27 }
 0x2cd   : > { %6975 = dma.done.wait (!%p6758_p1), %s4453_s6, 32  }
 0x2ce   : > { %6977 = vsyncadd (!%p6758_p1), %s4453_s6, 4294967264  ;;  %s26_s23 = sadd.s32 1, %s7000_s23   ;;  %s8190_s18 = smov %s6984_s19 }
 0x2cf   : > { %p23_p2 = scmp.ge.s32.totalorder %s26_s23, 4   ;;  %s8191_s19 = smov %s6988_s20 }
 0x2d0   : > { %s8192_s20 = smov %s7145_s15  ;;  %s8193_s21 = smov %s6996_s22 }
 0x2d1   : > { %s8194_s22 = smov %s8196_s9  ;;  %25 = sbr.rel (!%p23_p2) target bundleno = 9 (0x9), region = 122 }
 0x2d8   :  { %4458 = vsyncpa [#allocation4], 1 }
 0x2d9   :  { %4460 = vsyncpa [#allocation4 + $0x1], 1 }
 0x2da   :  { %4461 = vsyncpa [#allocation7], 1 }
 0x2db   :  { %4462 = vsyncpa [#allocation5], 1 }
 0x2dc   :  { %4464 = vsyncpa [#allocation5 + $0x1], 1 }
 0x2dd   :  { %4465 = vsyncpa [#allocation10], 1 }
 0x2de   :  { %4467 = vsyncpa [#allocation10 + $0x1], 1 }

</bundles_post_ra>
